<compile_context>
chip_gen: v7x
topology: tpu7x:2x2x1
jax: 0.10.0
libtpu: 0.0.40
codegen_flags: <defaults>
</compile_context>

<pallas_src>
import functools

import jax
import jax.numpy as jnp
from jax import lax
from jax.experimental import pallas as pl
from jax.experimental.pallas import tpu as pltpu


def textrcnn_kernel(tok_ref,                     # (S*B, 1) int32 tokens, time-major rows
                    lbl_ref,                     # (B, 1)   int32 labels
                    emb_ref,                     # (V, E)   embedding table
                    wi_f8_ref, wi_b8_ref,        # (E, 8H)  input weights, fused-gate cols
                    b8_ref,                      # (1, 8H)  combined biases, fused-gate cols
                    wh_cat_ref,                  # (2H, 8H) block-structured recurrent W
                    fcw_ref, fcb_ref,            # (E+2H, C), (1, C)
                    logits_ref, loss_ref,        # outputs: (B, C), (1, 1)
                    pre_f_ref, pre_b_ref,        # scratch: (S*B, 8H) f32 each (VMEM)
                    *, S, B, H, V, E, C):
    f32 = jnp.float32
    SB = S * B
    G = 8 * H

    # ---- batched in-kernel embedding gather: ONE one-hot + ONE matmul ---------------
    tok = tok_ref[...]                                                     # (SB, 1)
    oh = jnp.where(lax.broadcasted_iota(jnp.int32, (SB, V), 1) == tok,
                   1.0, 0.0).astype(f32)                                   # (SB, V)
    x_all = jnp.dot(oh, emb_ref[...], preferred_element_type=f32)          # (SB, E)

    # ---- batched input projections (+ bias added once), staged in VMEM scratch ------
    pre_f_ref[...] = (jnp.dot(x_all, wi_f8_ref[...], preferred_element_type=f32)
                      + b8_ref[...])                                       # (SB, 8H)
    pre_b_ref[...] = jnp.dot(x_all, wi_b8_ref[...], preferred_element_type=f32)

    # ---- maxpool(relu(x_embed)) over time: zero-init running max (exact) ------------
    xmax = jnp.zeros((B, E), f32)
    for t in range(S):
        xmax = jnp.maximum(xmax, x_all[t * B:(t + 1) * B, :])

    # ---- hoisted per-lane activation constants (sigmoid lanes = i,f,o ; tanh = g) ---
    lane = lax.broadcasted_iota(jnp.int32, (B, G), 1)
    is_sig = lane < 6 * H
    act_scale = jnp.where(is_sig, 0.5, 1.0).astype(f32)    # pre-scale AND post-scale
    act_off = jnp.where(is_sig, 0.5, 0.0).astype(f32)      # post offset

    # ---- fused bidirectional LSTM recurrence (fully unrolled) -----------------------
    wh_cat = wh_cat_ref[...]                     # (2H, 8H)
    h_cat = jnp.zeros((B, 2 * H), f32)           # [h_fwd | h_bwd]
    c_cat = jnp.zeros((B, 2 * H), f32)
    hmax = jnp.zeros((B, 2 * H), f32)            # running max(0, h) == maxpool(relu(h))
    for t in range(S):
        # fwd consumes time t, bwd consumes time S-1-t; slabs have disjoint column blocks
        pre_t = (pre_f_ref[t * B:(t + 1) * B, :]
                 + pre_b_ref[(S - 1 - t) * B:(S - t) * B, :])               # (B, 8H)
        gates = pre_t + jnp.dot(h_cat, wh_cat, preferred_element_type=f32)  # (B, 8H)
        # single full-width tanh; sigmoid(x) = 0.5*(1+tanh(x/2)) on the i/f/o lanes
        th = jnp.tanh(gates * act_scale)
        act = th * act_scale + act_off
        i_g = act[:, 0 * H:2 * H]                # [i_f | i_b]
        f_g = act[:, 2 * H:4 * H]                # [f_f | f_b]
        o_g = act[:, 4 * H:6 * H]                # [o_f | o_b]
        g_g = act[:, 6 * H:8 * H]                # [g_f | g_b]
        c_cat = f_g * c_cat + i_g * g_g
        h_cat = o_g * jnp.tanh(c_cat)
        hmax = jnp.maximum(hmax, h_cat)

    # ---- fc on pooled [x | h_fwd | h_bwd]; weight rows split (no lane concat) -------
    logits = (jnp.dot(xmax, fcw_ref[0:E, :], preferred_element_type=f32)
              + jnp.dot(hmax, fcw_ref[E:E + 2 * H, :], preferred_element_type=f32)
              + fcb_ref[...])
    logits_ref[...] = logits

    # ---- cross-entropy (mean); label pick via iota compare --------------------------
    m = jnp.max(logits, axis=-1, keepdims=True)
    lse = m + jnp.log(jnp.sum(jnp.exp(logits - m), axis=-1, keepdims=True))   # (B, 1)
    picked = jnp.sum(
        jnp.where(lax.broadcasted_iota(jnp.int32, (B, C), 1) == lbl_ref[...],
                  logits, 0.0),
        axis=-1, keepdims=True)                                               # (B, 1)
    loss_ref[...] = jnp.broadcast_to(jnp.sum(lse - picked) / B, (1, 1))


def _fuse_bilstm_params(wi_f, wh_f, b_f, wi_b, wh_b, b_b):
    """Rearrange per-direction LSTM weights into the fused-gate layout used in-kernel.

    Fused gate columns (width 8H): [i_f,i_b, f_f,f_b, o_f,o_b, g_f,g_b]
    (all sigmoid gates first, tanh gate last) matching h_cat = [h_f | h_b] of width 2H.
    Source gate order in the params is (i, f, g, o).  Pure permutation (exact).
    """
    H = wh_f.shape[0]
    fwd_off = [0 * H, 2 * H, 6 * H, 4 * H]     # destinations of fwd i, f, g, o
    bwd_off = [1 * H, 3 * H, 7 * H, 5 * H]     # destinations of bwd i, f, g, o

    def scatter_cols(src, offs):
        out = jnp.zeros((src.shape[0], 8 * H), src.dtype)
        for g in range(4):
            out = out.at[:, offs[g]:offs[g] + H].set(src[:, g * H:(g + 1) * H])
        return out

    wi_f8 = scatter_cols(wi_f, fwd_off)                            # (E, 8H)
    wi_b8 = scatter_cols(wi_b, bwd_off)                            # (E, 8H)
    b8 = scatter_cols(b_f, fwd_off) + scatter_cols(b_b, bwd_off)   # (1, 8H)

    wh_cat = jnp.zeros((2 * H, 8 * H), wh_f.dtype)                 # block-diag per gate
    for g in range(4):
        wh_cat = wh_cat.at[0:H, fwd_off[g]:fwd_off[g] + H].set(wh_f[:, g * H:(g + 1) * H])
        wh_cat = wh_cat.at[H:2 * H, bwd_off[g]:bwd_off[g] + H].set(wh_b[:, g * H:(g + 1) * H])
    return wi_f8, wi_b8, b8, wh_cat


def textrcnn_forward(x_tokens, labels, masks, params):
    # masks is unused in the reference forward (kept for signature parity)
    del masks
    emb = params["embedding"]                  # (V, E)
    B, S = x_tokens.shape
    V, E = emb.shape
    H = params["wh_f"].shape[0]
    C = params["fc_b"].shape[-1]

    wi_f8, wi_b8, b8, wh_cat = _fuse_bilstm_params(
        params["wi_f"], params["wh_f"], params["b_f"],
        params["wi_b"], params["wh_b"], params["b_b"])

    # only a tiny int32 transpose/reshape happens outside the kernel; the embedding
    # gather, projections, LSTM, pooling, fc and loss are all in-kernel.
    tok_flat = jnp.transpose(x_tokens).reshape(S * B, 1).astype(jnp.int32)   # time-major
    lbl_col = labels.reshape(B, 1).astype(jnp.int32)

    vmem = pl.BlockSpec(memory_space=pltpu.MemorySpace.VMEM)
    kern = functools.partial(textrcnn_kernel, S=S, B=B, H=H, V=V, E=E, C=C)
    logits, loss = pl.pallas_call(
        kern,
        out_shape=(jax.ShapeDtypeStruct((B, C), jnp.float32),
                   jax.ShapeDtypeStruct((1, 1), jnp.float32)),
        in_specs=[vmem] * 9,
        out_specs=(vmem, vmem),
        scratch_shapes=[pltpu.VMEM((S * B, 8 * H), jnp.float32),
                        pltpu.VMEM((S * B, 8 * H), jnp.float32)],
    )(tok_flat, lbl_col, emb, wi_f8, wi_b8, b8, wh_cat,
      params["fc_w"], params["fc_b"])
    return logits, loss[0, 0]


def textrcnn_reference(x_tokens, labels, params):
    """Pure-JAX reference mirroring the PyTorch forward (for a sanity check)."""
    emb = params["embedding"]
    x_embed = emb[x_tokens]                     # (B, S, E)
    B, S, E = x_embed.shape
    H = params["wh_f"].shape[0]

    def cell(x_t, h, c, wi, wh, b):
        g = x_t @ wi + h @ wh + b
        i = jax.nn.sigmoid(g[:, 0 * H:1 * H])
        f = jax.nn.sigmoid(g[:, 1 * H:2 * H])
        gg = jnp.tanh(g[:, 2 * H:3 * H])
        o = jax.nn.sigmoid(g[:, 3 * H:4 * H])
        c = f * c + i * gg
        h = o * jnp.tanh(c)
        return h, c

    hf = jnp.zeros((B, H)); cf = jnp.zeros((B, H))
    hb = jnp.zeros((B, H)); cb = jnp.zeros((B, H))
    out_f = []
    out_b = [None] * S
    for t in range(S):
        hf, cf = cell(x_embed[:, t, :], hf, cf,
                      params["wi_f"], params["wh_f"], params["b_f"])
        out_f.append(hf)
        tb = S - 1 - t
        hb, cb = cell(x_embed[:, tb, :], hb, cb,
                      params["wi_b"], params["wh_b"], params["b_b"])
        out_b[tb] = hb
    lstm_out = jnp.concatenate([jnp.stack(out_f, 1), jnp.stack(out_b, 1)], axis=2)
    feat = jnp.maximum(jnp.concatenate([x_embed, lstm_out], axis=2), 0.0)  # (B,S,E+2H)
    pooled = jnp.max(feat, axis=1)                                         # (B,E+2H)
    logits = pooled @ params["fc_w"] + params["fc_b"]
    lse = jax.nn.logsumexp(logits, axis=-1)
    nll = lse - jnp.take_along_axis(logits, labels[:, None], axis=-1)[:, 0]
    return logits, jnp.mean(nll)


if __name__ == "__main__":
    # small shapes consistent with the module
    V, E, H, C = 50, 16, 32, 4    # vocab_nums, embed_size, hidden_dim, class_nums
    B, S = 2, 8                   # batch, pad_size

    key = jax.random.PRNGKey(0)
    ks = jax.random.split(key, 12)

    embedding = jax.random.normal(ks[0], (V, E), jnp.float32) * 0.1
    embedding = embedding.at[0].set(0.0)          # padding_idx=0

    params = dict(
        embedding=embedding,
        wi_f=jax.random.normal(ks[1], (E, 4 * H), jnp.float32) * 0.1,
        wh_f=jax.random.normal(ks[2], (H, 4 * H), jnp.float32) * 0.1,
        b_f=jax.random.normal(ks[3], (1, 4 * H), jnp.float32) * 0.1,   # b_ih + b_hh combined
        wi_b=jax.random.normal(ks[4], (E, 4 * H), jnp.float32) * 0.1,
        wh_b=jax.random.normal(ks[5], (H, 4 * H), jnp.float32) * 0.1,
        b_b=jax.random.normal(ks[6], (1, 4 * H), jnp.float32) * 0.1,
        fc_w=jax.random.normal(ks[7], (E + 2 * H, C), jnp.float32) * 0.1,
        fc_b=jax.random.normal(ks[8], (1, C), jnp.float32) * 0.1,
    )
    # TODO(synk): nn.LSTM(dropout=...) with a single layer is a no-op in PyTorch; not modeled.

    x_tokens = jax.random.randint(ks[9], (B, S), 1, V, dtype=jnp.int32)
    labels = jax.random.randint(ks[10], (B,), 0, C, dtype=jnp.int32)
    masks = jnp.ones((B, S), jnp.float32)         # unused by forward, kept for parity

    logits, loss = textrcnn_forward(x_tokens, labels, masks, params)
    jax.block_until_ready((logits, loss))

    ref_logits, ref_loss = textrcnn_reference(x_tokens, labels, params)
    assert jnp.allclose(logits, ref_logits, rtol=1e-3, atol=1e-4), "logits mismatch"
    assert jnp.allclose(loss, ref_loss, rtol=1e-3, atol=1e-4), "loss mismatch"

    print("KERNEL_OK")
</pallas_src>

<mosaic_0001>
module attributes {stable_mosaic.version = 11 : i64} {
  func.func @textrcnn_kernel(%arg0: memref<16x1xi32, #tpu.memory_space<vmem>>, %arg1: memref<2x1xi32, #tpu.memory_space<vmem>>, %arg2: memref<50x16xf32, #tpu.memory_space<vmem>>, %arg3: memref<16x256xf32, #tpu.memory_space<vmem>>, %arg4: memref<16x256xf32, #tpu.memory_space<vmem>>, %arg5: memref<1x256xf32, #tpu.memory_space<vmem>>, %arg6: memref<64x256xf32, #tpu.memory_space<vmem>>, %arg7: memref<80x4xf32, #tpu.memory_space<vmem>>, %arg8: memref<1x4xf32, #tpu.memory_space<vmem>>, %arg9: memref<2x4xf32, #tpu.memory_space<vmem>>, %arg10: memref<1x1xf32, #tpu.memory_space<vmem>>, %arg11: memref<16x256xf32, #tpu.memory_space<vmem>>, %arg12: memref<16x256xf32, #tpu.memory_space<vmem>>) attributes {dimension_semantics = [], scalar_prefetch = 0 : i64, scratch_operands = 2 : i64, tpu.core_type = #tpu.core_type<tc>} {
    %c0 = arith.constant 0 : index
    %c0_0 = arith.constant 0 : index
    %0 = vector.load %arg0[%c0, %c0_0] : memref<16x1xi32, #tpu.memory_space<vmem>>, vector<16x1xi32>
    %1 = tpu.iota {dimensions = array<i32: 1>} : vector<16x50xi32>
    %2 = vector.broadcast %0 : vector<16x1xi32> to vector<16x50xi32>
    %3 = arith.cmpi eq, %1, %2 : vector<16x50xi32>
    %cst = arith.constant 1.000000e+00 : f32
    %cst_1 = arith.constant 0.000000e+00 : f32
    %4 = vector.broadcast %cst : f32 to vector<16x50xf32>
    %5 = vector.broadcast %cst_1 : f32 to vector<16x50xf32>
    %6 = arith.select %3, %4, %5 : vector<16x50xi1>, vector<16x50xf32>
    %c0_2 = arith.constant 0 : index
    %c0_3 = arith.constant 0 : index
    %7 = vector.load %arg2[%c0_2, %c0_3] : memref<50x16xf32, #tpu.memory_space<vmem>>, vector<50x16xf32>
    %cst_4 = arith.constant dense<0.000000e+00> : vector<16x16xf32>
    %8 = tpu.matmul %6, %7, %cst_4 {dimension_numbers = #tpu.dot_dimension_numbers<[1], [0], [0], [1], [0, 0, 1, 1], [], []>} : vector<16x50xf32>, vector<50x16xf32>, vector<16x16xf32> -> vector<16x16xf32>
    %c0_5 = arith.constant 0 : index
    %c0_6 = arith.constant 0 : index
    %9 = vector.load %arg3[%c0_5, %c0_6] : memref<16x256xf32, #tpu.memory_space<vmem>>, vector<16x256xf32>
    %cst_7 = arith.constant dense<0.000000e+00> : vector<16x256xf32>
    %10 = tpu.matmul %8, %9, %cst_7 {dimension_numbers = #tpu.dot_dimension_numbers<[1], [0], [0], [1], [0, 0, 1, 1], [], []>} : vector<16x16xf32>, vector<16x256xf32>, vector<16x256xf32> -> vector<16x256xf32>
    %c0_8 = arith.constant 0 : index
    %c0_9 = arith.constant 0 : index
    %11 = vector.load %arg5[%c0_8, %c0_9] : memref<1x256xf32, #tpu.memory_space<vmem>>, vector<1x256xf32>
    %12 = vector.broadcast %11 : vector<1x256xf32> to vector<16x256xf32>
    %13 = arith.addf %10, %12 : vector<16x256xf32>
    %c0_10 = arith.constant 0 : index
    %c0_11 = arith.constant 0 : index
    %14 = vector.load %arg11[%c0_10, %c0_11] : memref<16x256xf32, #tpu.memory_space<vmem>>, vector<16x256xf32>
    tpu.vector_store %arg11[%c0_10, %c0_11], %13 {strides = array<i32>} : memref<16x256xf32, #tpu.memory_space<vmem>>, vector<16x256xf32>,
    %c0_12 = arith.constant 0 : index
    %c0_13 = arith.constant 0 : index
    %15 = vector.load %arg4[%c0_12, %c0_13] : memref<16x256xf32, #tpu.memory_space<vmem>>, vector<16x256xf32>
    %cst_14 = arith.constant dense<0.000000e+00> : vector<16x256xf32>
    %16 = tpu.matmul %8, %15, %cst_14 {dimension_numbers = #tpu.dot_dimension_numbers<[1], [0], [0], [1], [0, 0, 1, 1], [], []>} : vector<16x16xf32>, vector<16x256xf32>, vector<16x256xf32> -> vector<16x256xf32>
    %c0_15 = arith.constant 0 : index
    %c0_16 = arith.constant 0 : index
    %17 = vector.load %arg12[%c0_15, %c0_16] : memref<16x256xf32, #tpu.memory_space<vmem>>, vector<16x256xf32>
    tpu.vector_store %arg12[%c0_15, %c0_16], %16 {strides = array<i32>} : memref<16x256xf32, #tpu.memory_space<vmem>>, vector<16x256xf32>,
    %cst_17 = arith.constant 0.000000e+00 : f32
    %18 = vector.broadcast %cst_17 : f32 to vector<2x16xf32>
    %19 = vector.extract_strided_slice %8 {offsets = [0, 0], sizes = [2, 16], strides = [1, 1]} : vector<16x16xf32> to vector<2x16xf32>
    %20 = arith.maximumf %18, %19 : vector<2x16xf32>
    %21 = vector.extract_strided_slice %8 {offsets = [2, 0], sizes = [2, 16], strides = [1, 1]} : vector<16x16xf32> to vector<2x16xf32>
    %22 = arith.maximumf %20, %21 : vector<2x16xf32>
    %23 = vector.extract_strided_slice %8 {offsets = [4, 0], sizes = [2, 16], strides = [1, 1]} : vector<16x16xf32> to vector<2x16xf32>
    %24 = arith.maximumf %22, %23 : vector<2x16xf32>
    %25 = vector.extract_strided_slice %8 {offsets = [6, 0], sizes = [2, 16], strides = [1, 1]} : vector<16x16xf32> to vector<2x16xf32>
    %26 = arith.maximumf %24, %25 : vector<2x16xf32>
    %27 = vector.extract_strided_slice %8 {offsets = [8, 0], sizes = [2, 16], strides = [1, 1]} : vector<16x16xf32> to vector<2x16xf32>
    %28 = arith.maximumf %26, %27 : vector<2x16xf32>
    %29 = vector.extract_strided_slice %8 {offsets = [10, 0], sizes = [2, 16], strides = [1, 1]} : vector<16x16xf32> to vector<2x16xf32>
    %30 = arith.maximumf %28, %29 : vector<2x16xf32>
    %31 = vector.extract_strided_slice %8 {offsets = [12, 0], sizes = [2, 16], strides = [1, 1]} : vector<16x16xf32> to vector<2x16xf32>
    %32 = arith.maximumf %30, %31 : vector<2x16xf32>
    %33 = vector.extract_strided_slice %8 {offsets = [14, 0], sizes = [2, 16], strides = [1, 1]} : vector<16x16xf32> to vector<2x16xf32>
    %34 = arith.maximumf %32, %33 : vector<2x16xf32>
    %35 = tpu.iota {dimensions = array<i32: 1>} : vector<2x256xi32>
    %c192_i32 = arith.constant 192 : i32
    %36 = vector.broadcast %c192_i32 : i32 to vector<2x256xi32>
    %37 = arith.cmpi slt, %35, %36 : vector<2x256xi32>
    %cst_18 = arith.constant 5.000000e-01 : f32
    %cst_19 = arith.constant 1.000000e+00 : f32
    %38 = vector.broadcast %cst_18 : f32 to vector<2x256xf32>
    %39 = vector.broadcast %cst_19 : f32 to vector<2x256xf32>
    %40 = arith.select %37, %38, %39 : vector<2x256xi1>, vector<2x256xf32>
    %cst_20 = arith.constant 5.000000e-01 : f32
    %cst_21 = arith.constant 0.000000e+00 : f32
    %41 = vector.broadcast %cst_20 : f32 to vector<2x256xf32>
    %42 = vector.broadcast %cst_21 : f32 to vector<2x256xf32>
    %43 = arith.select %37, %41, %42 : vector<2x256xi1>, vector<2x256xf32>
    %c0_22 = arith.constant 0 : index
    %c0_23 = arith.constant 0 : index
    %44 = vector.load %arg6[%c0_22, %c0_23] : memref<64x256xf32, #tpu.memory_space<vmem>>, vector<64x256xf32>
    %cst_24 = arith.constant 0.000000e+00 : f32
    %45 = vector.broadcast %cst_24 : f32 to vector<2x64xf32>
    %cst_25 = arith.constant 0.000000e+00 : f32
    %46 = vector.broadcast %cst_25 : f32 to vector<2x64xf32>
    %cst_26 = arith.constant 0.000000e+00 : f32
    %47 = vector.broadcast %cst_26 : f32 to vector<2x64xf32>
    %c0_27 = arith.constant 0 : index
    %c0_28 = arith.constant 0 : index
    %48 = vector.load %arg11[%c0_27, %c0_28] : memref<16x256xf32, #tpu.memory_space<vmem>>, vector<2x256xf32>
    %c14 = arith.constant 14 : index
    %c0_29 = arith.constant 0 : index
    %49 = vector.load %arg12[%c14, %c0_29] : memref<16x256xf32, #tpu.memory_space<vmem>>, vector<2x256xf32>
    %50 = arith.addf %48, %49 : vector<2x256xf32>
    %cst_30 = arith.constant dense<0.000000e+00> : vector<2x256xf32>
    %51 = tpu.matmul %45, %44, %cst_30 {dimension_numbers = #tpu.dot_dimension_numbers<[1], [0], [0], [1], [0, 0, 1, 1], [], []>} : vector<2x64xf32>, vector<64x256xf32>, vector<2x256xf32> -> vector<2x256xf32>
    %52 = arith.addf %50, %51 : vector<2x256xf32>
    %53 = arith.mulf %52, %40 : vector<2x256xf32>
    %54 = math.tanh %53 : vector<2x256xf32>
    %55 = arith.mulf %54, %40 : vector<2x256xf32>
    %56 = arith.addf %55, %43 : vector<2x256xf32>
    %57 = vector.extract_strided_slice %56 {offsets = [0, 0], sizes = [2, 64], strides = [1, 1]} : vector<2x256xf32> to vector<2x64xf32>
    %58 = vector.extract_strided_slice %56 {offsets = [0, 64], sizes = [2, 64], strides = [1, 1]} : vector<2x256xf32> to vector<2x64xf32>
    %59 = vector.extract_strided_slice %56 {offsets = [0, 128], sizes = [2, 64], strides = [1, 1]} : vector<2x256xf32> to vector<2x64xf32>
    %60 = vector.extract_strided_slice %56 {offsets = [0, 192], sizes = [2, 64], strides = [1, 1]} : vector<2x256xf32> to vector<2x64xf32>
    %61 = arith.mulf %58, %46 : vector<2x64xf32>
    %62 = arith.mulf %57, %60 : vector<2x64xf32>
    %63 = arith.addf %61, %62 : vector<2x64xf32>
    %64 = math.tanh %63 : vector<2x64xf32>
    %65 = arith.mulf %59, %64 : vector<2x64xf32>
    %66 = arith.maximumf %47, %65 : vector<2x64xf32>
    %c2 = arith.constant 2 : index
    %c0_31 = arith.constant 0 : index
    %67 = vector.load %arg11[%c2, %c0_31] : memref<16x256xf32, #tpu.memory_space<vmem>>, vector<2x256xf32>
    %c12 = arith.constant 12 : index
    %c0_32 = arith.constant 0 : index
    %68 = vector.load %arg12[%c12, %c0_32] : memref<16x256xf32, #tpu.memory_space<vmem>>, vector<2x256xf32>
    %69 = arith.addf %67, %68 : vector<2x256xf32>
    %cst_33 = arith.constant dense<0.000000e+00> : vector<2x256xf32>
    %70 = tpu.matmul %65, %44, %cst_33 {dimension_numbers = #tpu.dot_dimension_numbers<[1], [0], [0], [1], [0, 0, 1, 1], [], []>} : vector<2x64xf32>, vector<64x256xf32>, vector<2x256xf32> -> vector<2x256xf32>
    %71 = arith.addf %69, %70 : vector<2x256xf32>
    %72 = arith.mulf %71, %40 : vector<2x256xf32>
    %73 = math.tanh %72 : vector<2x256xf32>
    %74 = arith.mulf %73, %40 : vector<2x256xf32>
    %75 = arith.addf %74, %43 : vector<2x256xf32>
    %76 = vector.extract_strided_slice %75 {offsets = [0, 0], sizes = [2, 64], strides = [1, 1]} : vector<2x256xf32> to vector<2x64xf32>
    %77 = vector.extract_strided_slice %75 {offsets = [0, 64], sizes = [2, 64], strides = [1, 1]} : vector<2x256xf32> to vector<2x64xf32>
    %78 = vector.extract_strided_slice %75 {offsets = [0, 128], sizes = [2, 64], strides = [1, 1]} : vector<2x256xf32> to vector<2x64xf32>
    %79 = vector.extract_strided_slice %75 {offsets = [0, 192], sizes = [2, 64], strides = [1, 1]} : vector<2x256xf32> to vector<2x64xf32>
    %80 = arith.mulf %77, %63 : vector<2x64xf32>
    %81 = arith.mulf %76, %79 : vector<2x64xf32>
    %82 = arith.addf %80, %81 : vector<2x64xf32>
    %83 = math.tanh %82 : vector<2x64xf32>
    %84 = arith.mulf %78, %83 : vector<2x64xf32>
    %85 = arith.maximumf %66, %84 : vector<2x64xf32>
    %c4 = arith.constant 4 : index
    %c0_34 = arith.constant 0 : index
    %86 = vector.load %arg11[%c4, %c0_34] : memref<16x256xf32, #tpu.memory_space<vmem>>, vector<2x256xf32>
    %c10 = arith.constant 10 : index
    %c0_35 = arith.constant 0 : index
    %87 = vector.load %arg12[%c10, %c0_35] : memref<16x256xf32, #tpu.memory_space<vmem>>, vector<2x256xf32>
    %88 = arith.addf %86, %87 : vector<2x256xf32>
    %cst_36 = arith.constant dense<0.000000e+00> : vector<2x256xf32>
    %89 = tpu.matmul %84, %44, %cst_36 {dimension_numbers = #tpu.dot_dimension_numbers<[1], [0], [0], [1], [0, 0, 1, 1], [], []>} : vector<2x64xf32>, vector<64x256xf32>, vector<2x256xf32> -> vector<2x256xf32>
    %90 = arith.addf %88, %89 : vector<2x256xf32>
    %91 = arith.mulf %90, %40 : vector<2x256xf32>
    %92 = math.tanh %91 : vector<2x256xf32>
    %93 = arith.mulf %92, %40 : vector<2x256xf32>
    %94 = arith.addf %93, %43 : vector<2x256xf32>
    %95 = vector.extract_strided_slice %94 {offsets = [0, 0], sizes = [2, 64], strides = [1, 1]} : vector<2x256xf32> to vector<2x64xf32>
    %96 = vector.extract_strided_slice %94 {offsets = [0, 64], sizes = [2, 64], strides = [1, 1]} : vector<2x256xf32> to vector<2x64xf32>
    %97 = vector.extract_strided_slice %94 {offsets = [0, 128], sizes = [2, 64], strides = [1, 1]} : vector<2x256xf32> to vector<2x64xf32>
    %98 = vector.extract_strided_slice %94 {offsets = [0, 192], sizes = [2, 64], strides = [1, 1]} : vector<2x256xf32> to vector<2x64xf32>
    %99 = arith.mulf %96, %82 : vector<2x64xf32>
    %100 = arith.mulf %95, %98 : vector<2x64xf32>
    %101 = arith.addf %99, %100 : vector<2x64xf32>
    %102 = math.tanh %101 : vector<2x64xf32>
    %103 = arith.mulf %97, %102 : vector<2x64xf32>
    %104 = arith.maximumf %85, %103 : vector<2x64xf32>
    %c6 = arith.constant 6 : index
    %c0_37 = arith.constant 0 : index
    %105 = vector.load %arg11[%c6, %c0_37] : memref<16x256xf32, #tpu.memory_space<vmem>>, vector<2x256xf32>
    %c8 = arith.constant 8 : index
    %c0_38 = arith.constant 0 : index
    %106 = vector.load %arg12[%c8, %c0_38] : memref<16x256xf32, #tpu.memory_space<vmem>>, vector<2x256xf32>
    %107 = arith.addf %105, %106 : vector<2x256xf32>
    %cst_39 = arith.constant dense<0.000000e+00> : vector<2x256xf32>
    %108 = tpu.matmul %103, %44, %cst_39 {dimension_numbers = #tpu.dot_dimension_numbers<[1], [0], [0], [1], [0, 0, 1, 1], [], []>} : vector<2x64xf32>, vector<64x256xf32>, vector<2x256xf32> -> vector<2x256xf32>
    %109 = arith.addf %107, %108 : vector<2x256xf32>
    %110 = arith.mulf %109, %40 : vector<2x256xf32>
    %111 = math.tanh %110 : vector<2x256xf32>
    %112 = arith.mulf %111, %40 : vector<2x256xf32>
    %113 = arith.addf %112, %43 : vector<2x256xf32>
    %114 = vector.extract_strided_slice %113 {offsets = [0, 0], sizes = [2, 64], strides = [1, 1]} : vector<2x256xf32> to vector<2x64xf32>
    %115 = vector.extract_strided_slice %113 {offsets = [0, 64], sizes = [2, 64], strides = [1, 1]} : vector<2x256xf32> to vector<2x64xf32>
    %116 = vector.extract_strided_slice %113 {offsets = [0, 128], sizes = [2, 64], strides = [1, 1]} : vector<2x256xf32> to vector<2x64xf32>
    %117 = vector.extract_strided_slice %113 {offsets = [0, 192], sizes = [2, 64], strides = [1, 1]} : vector<2x256xf32> to vector<2x64xf32>
    %118 = arith.mulf %115, %101 : vector<2x64xf32>
    %119 = arith.mulf %114, %117 : vector<2x64xf32>
    %120 = arith.addf %118, %119 : vector<2x64xf32>
    %121 = math.tanh %120 : vector<2x64xf32>
    %122 = arith.mulf %116, %121 : vector<2x64xf32>
    %123 = arith.maximumf %104, %122 : vector<2x64xf32>
    %c8_40 = arith.constant 8 : index
    %c0_41 = arith.constant 0 : index
    %124 = vector.load %arg11[%c8_40, %c0_41] : memref<16x256xf32, #tpu.memory_space<vmem>>, vector<2x256xf32>
    %c6_42 = arith.constant 6 : index
    %c0_43 = arith.constant 0 : index
    %125 = vector.load %arg12[%c6_42, %c0_43] : memref<16x256xf32, #tpu.memory_space<vmem>>, vector<2x256xf32>
    %126 = arith.addf %124, %125 : vector<2x256xf32>
    %cst_44 = arith.constant dense<0.000000e+00> : vector<2x256xf32>
    %127 = tpu.matmul %122, %44, %cst_44 {dimension_numbers = #tpu.dot_dimension_numbers<[1], [0], [0], [1], [0, 0, 1, 1], [], []>} : vector<2x64xf32>, vector<64x256xf32>, vector<2x256xf32> -> vector<2x256xf32>
    %128 = arith.addf %126, %127 : vector<2x256xf32>
    %129 = arith.mulf %128, %40 : vector<2x256xf32>
    %130 = math.tanh %129 : vector<2x256xf32>
    %131 = arith.mulf %130, %40 : vector<2x256xf32>
    %132 = arith.addf %131, %43 : vector<2x256xf32>
    %133 = vector.extract_strided_slice %132 {offsets = [0, 0], sizes = [2, 64], strides = [1, 1]} : vector<2x256xf32> to vector<2x64xf32>
    %134 = vector.extract_strided_slice %132 {offsets = [0, 64], sizes = [2, 64], strides = [1, 1]} : vector<2x256xf32> to vector<2x64xf32>
    %135 = vector.extract_strided_slice %132 {offsets = [0, 128], sizes = [2, 64], strides = [1, 1]} : vector<2x256xf32> to vector<2x64xf32>
    %136 = vector.extract_strided_slice %132 {offsets = [0, 192], sizes = [2, 64], strides = [1, 1]} : vector<2x256xf32> to vector<2x64xf32>
    %137 = arith.mulf %134, %120 : vector<2x64xf32>
    %138 = arith.mulf %133, %136 : vector<2x64xf32>
    %139 = arith.addf %137, %138 : vector<2x64xf32>
    %140 = math.tanh %139 : vector<2x64xf32>
    %141 = arith.mulf %135, %140 : vector<2x64xf32>
    %142 = arith.maximumf %123, %141 : vector<2x64xf32>
    %c10_45 = arith.constant 10 : index
    %c0_46 = arith.constant 0 : index
    %143 = vector.load %arg11[%c10_45, %c0_46] : memref<16x256xf32, #tpu.memory_space<vmem>>, vector<2x256xf32>
    %c4_47 = arith.constant 4 : index
    %c0_48 = arith.constant 0 : index
    %144 = vector.load %arg12[%c4_47, %c0_48] : memref<16x256xf32, #tpu.memory_space<vmem>>, vector<2x256xf32>
    %145 = arith.addf %143, %144 : vector<2x256xf32>
    %cst_49 = arith.constant dense<0.000000e+00> : vector<2x256xf32>
    %146 = tpu.matmul %141, %44, %cst_49 {dimension_numbers = #tpu.dot_dimension_numbers<[1], [0], [0], [1], [0, 0, 1, 1], [], []>} : vector<2x64xf32>, vector<64x256xf32>, vector<2x256xf32> -> vector<2x256xf32>
    %147 = arith.addf %145, %146 : vector<2x256xf32>
    %148 = arith.mulf %147, %40 : vector<2x256xf32>
    %149 = math.tanh %148 : vector<2x256xf32>
    %150 = arith.mulf %149, %40 : vector<2x256xf32>
    %151 = arith.addf %150, %43 : vector<2x256xf32>
    %152 = vector.extract_strided_slice %151 {offsets = [0, 0], sizes = [2, 64], strides = [1, 1]} : vector<2x256xf32> to vector<2x64xf32>
    %153 = vector.extract_strided_slice %151 {offsets = [0, 64], sizes = [2, 64], strides = [1, 1]} : vector<2x256xf32> to vector<2x64xf32>
    %154 = vector.extract_strided_slice %151 {offsets = [0, 128], sizes = [2, 64], strides = [1, 1]} : vector<2x256xf32> to vector<2x64xf32>
    %155 = vector.extract_strided_slice %151 {offsets = [0, 192], sizes = [2, 64], strides = [1, 1]} : vector<2x256xf32> to vector<2x64xf32>
    %156 = arith.mulf %153, %139 : vector<2x64xf32>
    %157 = arith.mulf %152, %155 : vector<2x64xf32>
    %158 = arith.addf %156, %157 : vector<2x64xf32>
    %159 = math.tanh %158 : vector<2x64xf32>
    %160 = arith.mulf %154, %159 : vector<2x64xf32>
    %161 = arith.maximumf %142, %160 : vector<2x64xf32>
    %c12_50 = arith.constant 12 : index
    %c0_51 = arith.constant 0 : index
    %162 = vector.load %arg11[%c12_50, %c0_51] : memref<16x256xf32, #tpu.memory_space<vmem>>, vector<2x256xf32>
    %c2_52 = arith.constant 2 : index
    %c0_53 = arith.constant 0 : index
    %163 = vector.load %arg12[%c2_52, %c0_53] : memref<16x256xf32, #tpu.memory_space<vmem>>, vector<2x256xf32>
    %164 = arith.addf %162, %163 : vector<2x256xf32>
    %cst_54 = arith.constant dense<0.000000e+00> : vector<2x256xf32>
    %165 = tpu.matmul %160, %44, %cst_54 {dimension_numbers = #tpu.dot_dimension_numbers<[1], [0], [0], [1], [0, 0, 1, 1], [], []>} : vector<2x64xf32>, vector<64x256xf32>, vector<2x256xf32> -> vector<2x256xf32>
    %166 = arith.addf %164, %165 : vector<2x256xf32>
    %167 = arith.mulf %166, %40 : vector<2x256xf32>
    %168 = math.tanh %167 : vector<2x256xf32>
    %169 = arith.mulf %168, %40 : vector<2x256xf32>
    %170 = arith.addf %169, %43 : vector<2x256xf32>
    %171 = vector.extract_strided_slice %170 {offsets = [0, 0], sizes = [2, 64], strides = [1, 1]} : vector<2x256xf32> to vector<2x64xf32>
    %172 = vector.extract_strided_slice %170 {offsets = [0, 64], sizes = [2, 64], strides = [1, 1]} : vector<2x256xf32> to vector<2x64xf32>
    %173 = vector.extract_strided_slice %170 {offsets = [0, 128], sizes = [2, 64], strides = [1, 1]} : vector<2x256xf32> to vector<2x64xf32>
    %174 = vector.extract_strided_slice %170 {offsets = [0, 192], sizes = [2, 64], strides = [1, 1]} : vector<2x256xf32> to vector<2x64xf32>
    %175 = arith.mulf %172, %158 : vector<2x64xf32>
    %176 = arith.mulf %171, %174 : vector<2x64xf32>
    %177 = arith.addf %175, %176 : vector<2x64xf32>
    %178 = math.tanh %177 : vector<2x64xf32>
    %179 = arith.mulf %173, %178 : vector<2x64xf32>
    %180 = arith.maximumf %161, %179 : vector<2x64xf32>
    %c14_55 = arith.constant 14 : index
    %c0_56 = arith.constant 0 : index
    %181 = vector.load %arg11[%c14_55, %c0_56] : memref<16x256xf32, #tpu.memory_space<vmem>>, vector<2x256xf32>
    %c0_57 = arith.constant 0 : index
    %c0_58 = arith.constant 0 : index
    %182 = vector.load %arg12[%c0_57, %c0_58] : memref<16x256xf32, #tpu.memory_space<vmem>>, vector<2x256xf32>
    %183 = arith.addf %181, %182 : vector<2x256xf32>
    %cst_59 = arith.constant dense<0.000000e+00> : vector<2x256xf32>
    %184 = tpu.matmul %179, %44, %cst_59 {dimension_numbers = #tpu.dot_dimension_numbers<[1], [0], [0], [1], [0, 0, 1, 1], [], []>} : vector<2x64xf32>, vector<64x256xf32>, vector<2x256xf32> -> vector<2x256xf32>
    %185 = arith.addf %183, %184 : vector<2x256xf32>
    %186 = arith.mulf %185, %40 : vector<2x256xf32>
    %187 = math.tanh %186 : vector<2x256xf32>
    %188 = arith.mulf %187, %40 : vector<2x256xf32>
    %189 = arith.addf %188, %43 : vector<2x256xf32>
    %190 = vector.extract_strided_slice %189 {offsets = [0, 0], sizes = [2, 64], strides = [1, 1]} : vector<2x256xf32> to vector<2x64xf32>
    %191 = vector.extract_strided_slice %189 {offsets = [0, 64], sizes = [2, 64], strides = [1, 1]} : vector<2x256xf32> to vector<2x64xf32>
    %192 = vector.extract_strided_slice %189 {offsets = [0, 128], sizes = [2, 64], strides = [1, 1]} : vector<2x256xf32> to vector<2x64xf32>
    %193 = vector.extract_strided_slice %189 {offsets = [0, 192], sizes = [2, 64], strides = [1, 1]} : vector<2x256xf32> to vector<2x64xf32>
    %194 = arith.mulf %191, %177 : vector<2x64xf32>
    %195 = arith.mulf %190, %193 : vector<2x64xf32>
    %196 = arith.addf %194, %195 : vector<2x64xf32>
    %197 = math.tanh %196 : vector<2x64xf32>
    %198 = arith.mulf %192, %197 : vector<2x64xf32>
    %199 = arith.maximumf %180, %198 : vector<2x64xf32>
    %c0_60 = arith.constant 0 : index
    %c0_61 = arith.constant 0 : index
    %200 = vector.load %arg7[%c0_60, %c0_61] : memref<80x4xf32, #tpu.memory_space<vmem>>, vector<16x4xf32>
    %cst_62 = arith.constant dense<0.000000e+00> : vector<2x4xf32>
    %201 = tpu.matmul %34, %200, %cst_62 {dimension_numbers = #tpu.dot_dimension_numbers<[1], [0], [0], [1], [0, 0, 1, 1], [], []>} : vector<2x16xf32>, vector<16x4xf32>, vector<2x4xf32> -> vector<2x4xf32>
    %c16 = arith.constant 16 : index
    %c0_63 = arith.constant 0 : index
    %202 = vector.load %arg7[%c16, %c0_63] : memref<80x4xf32, #tpu.memory_space<vmem>>, vector<64x4xf32>
    %cst_64 = arith.constant dense<0.000000e+00> : vector<2x4xf32>
    %203 = tpu.matmul %199, %202, %cst_64 {dimension_numbers = #tpu.dot_dimension_numbers<[1], [0], [0], [1], [0, 0, 1, 1], [], []>} : vector<2x64xf32>, vector<64x4xf32>, vector<2x4xf32> -> vector<2x4xf32>
    %204 = arith.addf %201, %203 : vector<2x4xf32>
    %c0_65 = arith.constant 0 : index
    %c0_66 = arith.constant 0 : index
    %205 = vector.load %arg8[%c0_65, %c0_66] : memref<1x4xf32, #tpu.memory_space<vmem>>, vector<1x4xf32>
    %206 = vector.broadcast %205 : vector<1x4xf32> to vector<2x4xf32>
    %207 = arith.addf %204, %206 : vector<2x4xf32>
    %c0_67 = arith.constant 0 : index
    %c0_68 = arith.constant 0 : index
    %208 = vector.load %arg9[%c0_67, %c0_68] : memref<2x4xf32, #tpu.memory_space<vmem>>, vector<2x4xf32>
    tpu.vector_store %arg9[%c0_67, %c0_68], %207 {strides = array<i32>} : memref<2x4xf32, #tpu.memory_space<vmem>>, vector<2x4xf32>,
    %cst_69 = arith.constant dense<0xFF800000> : vector<2xf32>
    %209 = vector.multi_reduction <maximumf>, %207, %cst_69 [1] : vector<2x4xf32> to vector<2xf32>
    %210 = vector.shape_cast %209 : vector<2xf32> to vector<2x1xf32>
    %211 = vector.broadcast %210 : vector<2x1xf32> to vector<2x4xf32>
    %212 = arith.subf %207, %211 : vector<2x4xf32>
    %213 = math.exp %212 : vector<2x4xf32>
    %cst_70 = arith.constant dense<0.000000e+00> : vector<2xf32>
    %214 = vector.multi_reduction <add>, %213, %cst_70 [1] : vector<2x4xf32> to vector<2xf32>
    %215 = vector.shape_cast %214 : vector<2xf32> to vector<2x1xf32>
    %216 = math.log %215 : vector<2x1xf32>
    %217 = arith.addf %210, %216 : vector<2x1xf32>
    %218 = tpu.iota {dimensions = array<i32: 1>} : vector<2x4xi32>
    %c0_71 = arith.constant 0 : index
    %c0_72 = arith.constant 0 : index
    %219 = vector.load %arg1[%c0_71, %c0_72] : memref<2x1xi32, #tpu.memory_space<vmem>>, vector<2x1xi32>
    %220 = vector.broadcast %219 : vector<2x1xi32> to vector<2x4xi32>
    %221 = arith.cmpi eq, %218, %220 : vector<2x4xi32>
    %cst_73 = arith.constant 0.000000e+00 : f32
    %222 = vector.broadcast %cst_73 : f32 to vector<2x4xf32>
    %223 = arith.select %221, %207, %222 : vector<2x4xi1>, vector<2x4xf32>
    %cst_74 = arith.constant dense<0.000000e+00> : vector<2xf32>
    %224 = vector.multi_reduction <add>, %223, %cst_74 [1] : vector<2x4xf32> to vector<2xf32>
    %225 = vector.shape_cast %224 : vector<2xf32> to vector<2x1xf32>
    %226 = arith.subf %217, %225 : vector<2x1xf32>
    %227 = vector.shape_cast %226 : vector<2x1xf32> to vector<1x2x1xf32>
    %cst_75 = arith.constant dense<0.000000e+00> : vector<1xf32>
    %228 = vector.multi_reduction <add>, %227, %cst_75 [1, 2] : vector<1x2x1xf32> to vector<1xf32>
    %229 = vector.shape_cast %228 : vector<1xf32> to vector<1x1x1xf32>
    %230 = vector.extract %229[0, 0, 0] : f32 from vector<1x1x1xf32>
    %cst_76 = arith.constant 2.000000e+00 : f32
    %231 = arith.divf %230, %cst_76 : f32
    %232 = vector.broadcast %231 : f32 to vector<1x1xf32>
    %c0_77 = arith.constant 0 : index
    %c0_78 = arith.constant 0 : index
    %233 = vector.load %arg10[%c0_77, %c0_78] : memref<1x1xf32, #tpu.memory_space<vmem>>, vector<1x1xf32>
    tpu.vector_store %arg10[%c0_77, %c0_78], %232 {strides = array<i32>} : memref<1x1xf32, #tpu.memory_space<vmem>>, vector<1x1xf32>,
    return
  }
}

</mosaic_0001>

<bundles_post_ra>
// kernel: tpu_custom_call.1
= control target key start
LH: loop header
LB: loop body
LE: loop exit
PB: predicated region body
PF: predicated region fallthrough
CT: control target
= control target key end

     0   :  { %16 = vsyncpa [#allocation5], 0  ;;  %v1947_v2 = vmov 0   ;;  %s2356_s0 = inlined_call_operand.vmem [shape: s32[16,1], index: 0, kind: input, shape index: {}]   ;;  %s2357_s1 = inlined_call_operand.vmem [shape: s32[2,1], index: 1, kind: input, shape index: {}]   ;;  %s2358_s2 = inlined_call_operand.vmem [shape: f32[50,16], index: 2, kind: input, shape index: {}]   ;;  %s2359_s3 = inlined_call_operand.vmem [shape: f32[16,256], index: 3, kind: input, shape index: {}]   ;;  %s2360_s4 = inlined_call_operand.vmem [shape: f32[16,256], index: 4, kind: input, shape index: {}]   ;;  %s2361_s5 = inlined_call_operand.vmem [shape: f32[1,256], index: 5, kind: input, shape index: {}]   ;;  %s2362_s6 = inlined_call_operand.vmem [shape: f32[64,256], index: 6, kind: input, shape index: {}]   ;;  %s2363_s7 = inlined_call_operand.vmem [shape: f32[80,4], index: 7, kind: input, shape index: {}]   ;;  %s2364_s8 = inlined_call_operand.vmem [shape: f32[1,4], index: 8, kind: input, shape index: {}]   ;;  %s2365_s9 = inlined_call_operand.hbm [shape: f32[2,4], index: 9, kind: output, shape index: {0}]   ;;  %s2366_s10 = inlined_call_operand.hbm [shape: f32[1,1], index: 10, kind: output, shape index: {1}]  }
   0x1   :  { %v36_v0 = vld [vmem:[%s2356_s0] sm:$0xff]  ;;  %1845 = vset.pattern.permute.xlu0 %v1947_v2  ;;  %v51_v3 = vld [vmem:[%s2358_s2 + $0x8] sm:$0xff]  ;;  %v52_v4 = vld [vmem:[%s2358_s2 + $0x10] sm:$0xff]  ;;  %1846 = vset.pattern.permute.xlu1 %v1947_v2 }
   0x2   :  { %v50_v1 = vld [vmem:[%s2358_s2] sm:$0xff]  ;;  %v53_v5 = vld [vmem:[%s2358_s2 + $0x18] sm:$0xff]  ;;  %41 = vperm.xlu0 %1845, %v36_v0  }
   0x3   :  { %v1672_v6 = vpack.c.bf16 %v51_v3, %v50_v1  ;;  %v1676_v7 = vpack.c.bf16 %v53_v5, %v52_v4 }
   0x4   :  { %17 = vsyncpa [#allocation7], 0  ;;  %v37_v8 = vld [vmem:[%s2356_s0 + $0x8] sm:$0xff]  ;;  %v54_v9 = vld [vmem:[%s2358_s2 + $0x20] sm:$0xff]  ;;  %v1948_v11 = vmov 0.0   ;;  %vm64_vm0 = vcmask 1041408   ;;  %v38_v23 = vlaneseq }
   0x5   :  { %v55_v10 = vld [vmem:[%s2358_s2 + $0x28] sm:$0xff]  ;;  %315 = vmatprep.mubr.f32.mxu1 %v1948_v11  ;;  %1673 = vmatprep.subr.bf16.mxu0 %v1672_v6  ;;  %v250_v14 = vld [vmem:[%s2360_s4 + $0x18] sm:$0xff]  ;;  %v247_v16 = vld [vmem:[%s2360_s4] sm:$0xff]  ;;  %vm57_vm1 = vcmask 408576   ;;  %vm159_vm4 = vcmask 130048   ;;  %vm387_vm6 = vcmask 523264  }
   0x6   :  { %1675 = vmatpush3.bf16.msra.mxu0 %v1672_v6  ;;  %44 = vperm.xlu0 %1845, %v37_v8   ;;  %v1680_v12 = vpack.c.bf16 %v55_v10, %v54_v9  ;;  %v248_v13 = vld [vmem:[%s2360_s4 + $0x8] sm:$0xff]  ;;  %v249_v17 = vld [vmem:[%s2360_s4 + $0x10] sm:$0xff]  ;;  %v146_v21 = vld [vmem:[%s2359_s3 + $0x18] sm:$0xff]  ;;  %v2057_v24 = vand.u32 127, %v38_v23  ;;  %v150_v8 = vshrl.u32 %v38_v23, 7  ;;  %vm1952_vm7 = vmmov 0  }
   0x7   :  { %1677 = vmatprep.subr.bf16.mxu0 %v1676_v7  ;;  %v1688_v15 = vpack.c.bf16 %v250_v14, %v248_v13  ;;  %v1690_v18 = vpack.c.bf16 %v249_v17, %v247_v16  ;;  %v56_v19 = vld [vmem:[%s2358_s2 + $0x30] sm:$0x3]  ;;  %v144_v20 = vld [vmem:[%s2359_s3 + $0x8] sm:$0xff]  ;;  %v143_v26 = vld [vmem:[%s2359_s3] sm:$0xff]  ;;  %vm1522_vm8 = vcmask 25600   ;;  %vm1546_vm10 = vcmask 1024  }
   0x8   :  { %v1684_v22 = vpack.c.bf16 %v146_v21, %v144_v20  ;;  %v145_v27 = vld [vmem:[%s2359_s3 + $0x10] sm:$0xff]  ;;  %v360_v32 = vld [vmem:[%s2362_s6 + $0x8] sm:$0xff]  ;;  %v362_v33 = vld [vmem:[%s2362_s6 + $0x18] sm:$0xff]  ;;  %v151_v9 = vsub.s32 0, %v150_v8 }
   0x9   :  { %1689 = vmatprep.subr.bf16.mxu1 %v1688_v15  ;;  %v1686_v30 = vpack.c.bf16 %v145_v27, %v143_v26  ;;  %v2076_v34 = vpack.c.bf16 %v362_v33, %v360_v32  ;;  %v359_v35 = vld [vmem:[%s2362_s6] sm:$0xff]  ;;  %v361_v36 = vld [vmem:[%s2362_s6 + $0x10] sm:$0xff]  ;;  %v364_v37 = vld [vmem:[%s2362_s6 + $0x28] sm:$0xff] }
   0xa   :  { %1679 = vmatpush3.bf16.msra.mxu0 %v1676_v7  ;;  %1691 = vmatpush1.bf16.msra.mxu1 %v1690_v18  ;;  %v366_v38 = vld [vmem:[%s2362_s6 + $0x38] sm:$0xff]  ;;  %v2092_v39 = vpack.c.bf16 %v361_v36, %v359_v35  ;;  %v363_v42 = vld [vmem:[%s2362_s6 + $0x20] sm:$0xff]  ;;  %v365_v43 = vld [vmem:[%s2362_s6 + $0x30] sm:$0xff]  ;;  %v1949_v35 = vmov 1.0  }
   0xb   :  { %1681 = vmatprep.subr.bf16.mxu0 %v1680_v12  ;;  %1693 = vmatprep.subr.bf16.mxu1 %v2076_v34  ;;  %v2094_v41 = vpack.c.bf16 %v366_v38, %v364_v37  ;;  %v368_v45 = vld [vmem:[%s2362_s6 + $0x48] sm:$0xff]  ;;  %v370_v46 = vld [vmem:[%s2362_s6 + $0x58] sm:$0xff]  ;;  %v2112_v49 = vpack.c.bf16 %v365_v43, %v363_v42  ;;  %v367_v53 = vld [vmem:[%s2362_s6 + $0x40] sm:$0xff] }
   0xc   :  { %v2116_v52 = vpack.c.bf16 %v370_v46, %v368_v45  ;;  %v369_v54 = vld [vmem:[%s2362_s6 + $0x50] sm:$0xff]  ;;  %v372_v55 = vld [vmem:[%s2362_s6 + $0x68] sm:$0xff]  ;;  %v374_v56 = vld [vmem:[%s2362_s6 + $0x78] sm:$0xff] }
   0xd   :  { %v2134_v59 = vpack.c.bf16 %v369_v54, %v367_v53  ;;  %v2138_v61 = vpack.c.bf16 %v374_v56, %v372_v55  ;;  %v371_v62 = vld [vmem:[%s2362_s6 + $0x60] sm:$0xff]  ;;  %v373_v63 = vld [vmem:[%s2362_s6 + $0x70] sm:$0xff] }
   0xe   :  { %1683 = vmatpush3.bf16.msra.mxu0 %v1680_v12  ;;  %v2151_v2 = vpack.c.bf16 %v373_v63, %v371_v62  ;;  %v147_v10 = vld [vmem:[%s2361_s5] sm:$0x3]  ;;  %v155_v12 = vsub.s32 1, %v150_v8  ;;  %s1950_s5 = smov 64  }
   0xf   :  { %1641 = vmatprep.subr.msk.mxu0 %vm64_vm0, %v56_v19  ;;  %v152_v13 = vrot.slane %v147_v10, %v151_v9 }
  0x10   :  { %v156_v14 = vrot.slane %v147_v10, %v155_v12 }
  0x12   :  { %1642 = vmatpush3.msk.msra.mxu0 %vm64_vm0, %v56_v19 }
  0x13   :  { %1685 = vmatprep.subr.bf16.mxu0 %v1684_v22 }
  0x81   :  { %v42_v25 = vpop.permute.xlu0 %41 }
  0x82   :  { %vm46_vm2 = vcmp.eq.s32.totalorder %v2057_v24, %v42_v25 }
  0x83   :  { %v48_v28 = vsel %vm46_vm2, 1.0, %v1948_v11 }
  0x84   :  { %1643 = vmatprep.mubr.msk.f32.mxu0 %vm57_vm1, %v48_v28  ;;  %v352_v28 = vadd.s32 128, %v2057_v24 }
  0x85   :  { %v45_v29 = vpop.permute.xlu0 %44 }
  0x86   :  { %vm47_vm3 = vcmp.eq.s32.totalorder %v2057_v24, %v45_v29  ;;  %vm354_vm5 = vcmp.lt.s32.totalorder %v352_v28, 192 }
  0x87   :  { %v49_v31 = vsel %vm47_vm3, 1.0, %v1948_v11  ;;  %v2177_v36 = vsel %vm354_vm5, 0.5, %v1949_v35  ;;  %v2181_v43 = vsel %vm354_vm5, 0.5, %v1948_v11 }
  0x88   :  { %1644 = vmatmul.mubr.msk.f32.vlgmr.msra.gmra.mrb[0].mxu0 %vm57_vm1, %v49_v31 }
  0x89   :  { %1687 = vmatpush1.bf16.msra.mxu0 %v1686_v30  ;;  %230 = vmatprep.mubr.f32.mxu0 %v1948_v11 }
  0x8a   :  { %1709 = vmatprep.subr.bf16.mxu0 %v2076_v34 }
 0x15b   :  { %v1645_v40 = vpop.f32.mrb[0].mxu0 }
 0x15c   :  { %v134_v44 = vpop.f32.mrb[1].mxu0  ;;  %v343_v0 = vrot.slane %v1645_v40, 2  ;;  %v346_v3 = vrot.slane %v1645_v40, 4  ;;  %v349_v5 = vrot.slane %v1645_v40, 6 }
 0x15d   :  { %v332_v47 = vmax.f32 %v134_v44, 0.0  ;;  %v333_v48 = vrot.slane %v134_v44, 2  ;;  %1594 = vmatmul.mubr.msk.f32.vlgmr.msra.gmra.mrb[2].mxu0 %vm159_vm4, %v134_v44  ;;  %1596 = vmatmul.mubr.msk.f32.vlgmr.msra.gmra.mrb[0].mxu1 %vm159_vm4, %v134_v44  ;;  %v336_v51 = vrot.slane %v134_v44, 4  ;;  %v339_v58 = vrot.slane %v134_v44, 6 }
 0x15e   :  { %1695 = vmatpush1.bf16.msra.mxu1 %v2092_v39  ;;  %236 = vmatprep.mubr.f32.mxu0 %v1948_v11 }
 0x15f   :  { %v335_v50 = vmax.f32 %v332_v47, %v333_v48  ;;  %321 = vmatprep.mubr.f32.mxu1 %v1948_v11  ;;  %1697 = vmatprep.subr.bf16.mxu1 %v2094_v41 }
 0x160   :  { %1711 = vmatpush1.bf16.msra.mxu0 %v2092_v39 }
 0x161   :  { %v338_v57 = vmax.f32 %v335_v50, %v336_v51  ;;  %1595 = vmatmul.mubr.msk.f32.gmra.mrb[4].mxu0 %vm159_vm4, %v1645_v40  ;;  %1597 = vmatmul.mubr.msk.f32.gmra.mrb[2].mxu1 %vm159_vm4, %v1645_v40 }
 0x162   :  { %1699 = vmatpush1.bf16.msra.mxu1 %v2112_v49  ;;  %455 = vmatprep.mubr.f32.mxu1 %v1948_v11 }
 0x163   :  { %v341_v60 = vmax.f32 %v338_v57, %v339_v58  ;;  %1701 = vmatprep.subr.bf16.mxu1 %v2116_v52  ;;  %1713 = vmatprep.subr.bf16.mxu0 %v2094_v41 }
 0x164   :  { %1715 = vmatpush1.bf16.msra.mxu0 %v2112_v49  ;;  %569 = vmatprep.mubr.f32.mxu0 %v1948_v11 }
 0x165   :  { %v342_v1 = vmax.f32 %v341_v60, %v1645_v40  ;;  %1717 = vmatprep.subr.bf16.mxu0 %v2116_v52 }
 0x166   :  { %1703 = vmatpush1.bf16.msra.mxu1 %v2134_v59 }
 0x167   :  { %1705 = vmatprep.subr.bf16.mxu1 %v2138_v61  ;;  %v345_v4 = vmax.f32 %v342_v1, %v343_v0 }
 0x168   :  { %1719 = vmatpush1.bf16.msra.mxu0 %v2134_v59 }
 0x169   :  { %1721 = vmatprep.subr.bf16.mxu0 %v2138_v61  ;;  %v348_v6 = vmax.f32 %v345_v4, %v346_v3 }
 0x16a   :  { %1707 = vmatpush1.bf16.msra.mxu1 %v2151_v2 }
 0x16b   :  { %1725 = vmatprep.subr.bf16.mxu1 %v2076_v34  ;;  %v2158_v7 = vmax.f32 %v348_v6, %v349_v5 }
 0x16c   :  { %1723 = vmatpush1.bf16.msra.mxu0 %v2151_v2 }
 0x16d   :  { %456 = vmatmul.mubr.f32.vlgmr.msra.gmra.mrb[4].mxu1 %v1948_v11  ;;  %1741 = vmatprep.subr.bf16.mxu0 %v2076_v34 }
 0x16e   :  { %1727 = vmatpush1.bf16.msra.mxu1 %v2092_v39  ;;  %694 = vmatprep.mubr.f32.mxu1 %v1948_v11 }
 0x16f   :  { %1729 = vmatprep.subr.bf16.mxu1 %v2094_v41 }
 0x172   :  { %1731 = vmatpush1.bf16.msra.mxu1 %v2112_v49 }
 0x173   :  { %1733 = vmatprep.subr.bf16.mxu1 %v2116_v52 }
 0x176   :  { %1735 = vmatpush1.bf16.msra.mxu1 %v2134_v59 }
 0x177   :  { %1737 = vmatprep.subr.bf16.mxu1 %v2138_v61 }
 0x17a   :  { %1739 = vmatpush1.bf16.msra.mxu1 %v2151_v2 }
 0x17b   :  { %1757 = vmatprep.subr.bf16.mxu1 %v2076_v34 }
 0x230   :  { %v232_v15 = vpop.f32.mrb[2].mxu0  ;;  %v317_v16 = vpop.f32.mrb[0].mxu1 }
 0x231   :  { %v233_v17 = vadd.f32 %v232_v15, %v152_v13  ;;  %328 = vst [vmem:[#allocation3] sm:$0xff] %v317_v16  ;;  %v234_v18 = vpop.f32.mrb[3].mxu0  ;;  %v319_v19 = vpop.f32.mrb[1].mxu1 }
 0x232   :  { %v235_v20 = vadd.f32 %v234_v18, %v156_v14  ;;  %329 = vst [vmem:[#allocation3 + $0x8] sm:$0xff] %v319_v19 }
 0x233   :  { %243 = vst [vmem:[#allocation2] sm:$0xff] %v233_v17 }
 0x234   :  { %244 = vst [vmem:[#allocation2 + $0x8] sm:$0xff] %v235_v20  ;;  %v238_v21 = vpop.f32.mrb[4].mxu0  ;;  %v323_v22 = vpop.f32.mrb[2].mxu1 }
 0x235   :  { %v239_v23 = vadd.f32 %v238_v21, %v152_v13  ;;  %330 = vst [vmem:[#allocation3 + $0x10] sm:$0xff] %v323_v22  ;;  %v240_v25 = vpop.f32.mrb[5].mxu0  ;;  %v325_v26 = vpop.f32.mrb[3].mxu1 }
 0x236   :  { %v241_v27 = vadd.f32 %v240_v25, %v156_v14  ;;  %331 = vst [vmem:[#allocation3 + $0x18] sm:$0xff] %v325_v26 }
 0x237   :  { %245 = vst [vmem:[#allocation2 + $0x10] sm:$0xff] %v239_v23 }
 0x238   :  { %246 = vst [vmem:[#allocation2 + $0x18] sm:$0xff] %v241_v27 }
 0x23a   :  { %v375_v48 = vld [vmem:[#allocation2] sm:$0x3]  ;;  %v490_v21 = vld [vmem:[#allocation2] sm:$0xc] }
 0x23b   :  { %v376_v31 = vld [vmem:[#allocation2 + $0x8] sm:$0x3]  ;;  %v491_v8 = vld [vmem:[#allocation2 + $0x8] sm:$0xc] }
 0x23c   :  { %v377_v46 = vld [vmem:[#allocation3 + $0x10] sm:$0xc0]  ;;  %v492_v18 = vld [vmem:[#allocation3 + $0x10] sm:$0x30] }
 0x23d   :  { %v378_v29 = vld [vmem:[#allocation3 + $0x18] sm:$0xc0]  ;;  %v381_v47 = vrot.slane %v377_v46, 6  ;;  %v493_v4 = vld [vmem:[#allocation3 + $0x18] sm:$0x30]  ;;  %v496_v19 = vrot.slane %v492_v18, 2 }
 0x23e   :  { %v382_v30 = vrot.slane %v378_v29, 6  ;;  %v497_v5 = vrot.slane %v493_v4, 2  ;;  %v619_v46 = vld [vmem:[#allocation3 + $0x18] sm:$0xc] }
 0x23f   :  { %v385_v50 = vadd.f32 %v381_v47, %v375_v48  ;;  %v500_v22 = vadd.f32 %v496_v19, %v490_v21  ;;  %v623_v47 = vrot.slane %v619_v46, 6 }
 0x240   :  { %v457_v32 = vpop.f32.mrb[4].mxu1  ;;  %v386_v33 = vadd.f32 %v382_v30, %v376_v31  ;;  %v501_v10 = vadd.f32 %v497_v5, %v491_v8 }
 0x241   :  { %v459_v37 = vpop.f32.mrb[5].mxu1  ;;  %v462_v51 = vadd.f32 %v457_v32, %v385_v50  ;;  %v617_v50 = vld [vmem:[#allocation2 + $0x8] sm:$0x30] }
 0x242   :  { %v463_v38 = vadd.f32 %v459_v37, %v386_v33 }
 0x243   :  { %v464_v53 = vmul.f32 0.5, %v462_v51 }
 0x244   :  { %v465_v40 = vmul.f32 %v463_v38, %v2177_v36 }
 0x246   :  { %1847 = vtanh.f32 %v465_v40 }
 0x247   :  { %1849 = vtanh.f32 %v464_v53  ;;  %v627_v53 = vadd.f32 %v623_v47, %v617_v50 }
 0x250   :  { %v1848_v42 = vpop.eup %1847 }
 0x251   :  { %v469_v44 = vmul.f32 %v1848_v42, %v2177_v36  ;;  %v1850_v54 = vpop.eup %1849 }
 0x252   :  { %v468_v55 = vmul.f32 0.5, %v1850_v54 }
 0x253   :  { %v471_v45 = vadd.f32 %v469_v44, %v2181_v43 }
 0x254   :  { %v470_v56 = vadd.f32 0.5, %v468_v55 }
 0x255   :  { %474 = vrot.lane.b32.xlu1 %v471_v45, %s1950_s5 }
 0x256   :  { %v472_v60 = vmul.f32 0.0, %v470_v56 }
 0x2c7   :  { %v475_v57 = vpop.permute.xlu1 %474 }
 0x2c8   :  { %v477_v58 = vmul.f32 %v475_v57, %v470_v56 }
 0x2ca   :  { %479 = vrot.lane.b32.xlu1 %v477_v58, %s1950_s5 }
 0x33c   :  { %v480_v62 = vpop.permute.xlu1 %479 }
 0x33d   :  { %v482_v63 = vadd.f32 %v480_v62, %v472_v60  ;;  %v618_v62 = vld [vmem:[#allocation3 + $0x10] sm:$0xc] }
 0x33f   :  { %1851 = vtanh.f32 %v482_v63  ;;  %v593_v31 = vrot.slane %v482_v63, 6  ;;  %v622_v63 = vrot.slane %v618_v62, 6 }
 0x349   :  { %v1852_v0 = vpop.eup %1851 }
 0x34a   :  { %485 = vrot.lane.b32.xlu0 %v1852_v0, %s1950_s5 }
 0x3bc   :  { %v486_v1 = vpop.permute.xlu0 %485 }
 0x3bd   :  { %v488_v3 = vmul.f32 %v486_v1, %v471_v45  ;;  %v616_v1 = vld [vmem:[#allocation2] sm:$0x30] }
 0x3bf   :  { %1598 = vmatmul.mubr.msk.f32.vlgmr.msra.gmra.mrb[6].mxu0 %vm387_vm6, %v488_v3  ;;  %v489_v42 = vmax.f32 %v488_v3, 0.0  ;;  %v626_v3 = vadd.f32 %v622_v63, %v616_v1  ;;  %v867_v1 = vld [vmem:[#allocation2 + $0x18] sm:$0x3] }
 0x3c0   :  { %1743 = vmatpush1.bf16.msra.mxu0 %v2092_v39  ;;  %819 = vmatprep.mubr.f32.mxu0 %v1948_v11 }
 0x3c1   :  { %1745 = vmatprep.subr.bf16.mxu0 %v2094_v41 }
 0x3c4   :  { %1747 = vmatpush1.bf16.msra.mxu0 %v2112_v49 }
 0x3c5   :  { %1749 = vmatprep.subr.bf16.mxu0 %v2116_v52 }
 0x3c8   :  { %1751 = vmatpush1.bf16.msra.mxu0 %v2134_v59 }
 0x3c9   :  { %1753 = vmatprep.subr.bf16.mxu0 %v2138_v61 }
 0x3cc   :  { %1755 = vmatpush1.bf16.msra.mxu0 %v2151_v2 }
 0x3cd   :  { %1773 = vmatprep.subr.bf16.mxu0 %v2076_v34 }
 0x492   :  { %v571_v6 = vpop.f32.mrb[6].mxu0 }
 0x493   :  { %v573_v9 = vpop.f32.mrb[7].mxu0  ;;  %v578_v20 = vrot.slane %v571_v6, 6 }
 0x494   :  { %v579_v12 = vrot.slane %v573_v9, 6 }
 0x495   :  { %v582_v23 = vadd.f32 %v578_v20, %v500_v22  ;;  %v744_v22 = vld [vmem:[#allocation3 + $0x18] sm:$0x3] }
 0x496   :  { %v583_v13 = vadd.f32 %v579_v12, %v501_v10 }
 0x497   :  { %v584_v25 = vmul.f32 0.5, %v582_v23  ;;  %v748_v23 = vrot.slane %v744_v22, 2 }
 0x498   :  { %v585_v14 = vmul.f32 %v583_v13, %v2177_v36 }
 0x49a   :  { %1853 = vtanh.f32 %v585_v14 }
 0x49b   :  { %1855 = vtanh.f32 %v584_v25 }
 0x4a4   :  { %v1854_v15 = vpop.eup %1853 }
 0x4a5   :  { %v589_v16 = vmul.f32 %v1854_v15, %v2177_v36  ;;  %v1856_v26 = vpop.eup %1855 }
 0x4a6   :  { %v588_v27 = vmul.f32 0.5, %v1856_v26  ;;  %v742_v26 = vld [vmem:[#allocation2 + $0x8] sm:$0xc0] }
 0x4a7   :  { %v591_v17 = vadd.f32 %v589_v16, %v2181_v43 }
 0x4a8   :  { %v590_v28 = vadd.f32 0.5, %v588_v27 }
 0x4a9   :  { %597 = vrot.lane.b32.xlu1 %v591_v17, %s1950_s5 }
 0x4aa   :  { %v595_v32 = vmul.f32 %v593_v31, %v590_v28 }
 0x51b   :  { %v598_v29 = vpop.permute.xlu1 %597 }
 0x51c   :  { %v600_v30 = vmul.f32 %v598_v29, %v590_v28  ;;  %v752_v28 = vadd.f32 %v748_v23, %v742_v26 }
 0x51e   :  { %602 = vrot.lane.b32.xlu0 %v600_v30, %s1950_s5 }
 0x590   :  { %v603_v33 = vpop.permute.xlu0 %602 }
 0x591   :  { %v605_v35 = vadd.f32 %v603_v33, %v595_v32 }
 0x593   :  { %1857 = vtanh.f32 %v605_v35  ;;  %v718_v13 = vrot.slane %v605_v35, 6 }
 0x59d   :  { %v1858_v37 = vpop.eup %1857 }
 0x59e   :  { %608 = vrot.lane.b32.xlu1 %v1858_v37, %s1950_s5  ;;  %v743_v37 = vld [vmem:[#allocation3 + $0x10] sm:$0x3] }
 0x610   :  { %v609_v38 = vpop.permute.xlu1 %608 }
 0x611   :  { %v611_v40 = vmul.f32 %v609_v38, %v591_v17 }
 0x613   :  { %v613_v44 = vrot.slane %v611_v40, 2  ;;  %v741_v40 = vld [vmem:[#allocation2] sm:$0xc0] }
 0x615   :  { %v615_v45 = vmax.f32 %v489_v42, %v613_v44  ;;  %1599 = vmatmul.mubr.msk.f32.vlgmr.msra.gmra.mrb[6].mxu1 %vm387_vm6, %v613_v44 }
 0x616   :  { %1759 = vmatpush1.bf16.msra.mxu1 %v2092_v39  ;;  %944 = vmatprep.mubr.f32.mxu1 %v1948_v11 }
 0x617   :  { %1761 = vmatprep.subr.bf16.mxu1 %v2094_v41 }
 0x61a   :  { %1763 = vmatpush1.bf16.msra.mxu1 %v2112_v49 }
 0x61b   :  { %1765 = vmatprep.subr.bf16.mxu1 %v2116_v52 }
 0x61e   :  { %1767 = vmatpush1.bf16.msra.mxu1 %v2134_v59 }
 0x61f   :  { %1769 = vmatprep.subr.bf16.mxu1 %v2138_v61 }
 0x622   :  { %1771 = vmatpush1.bf16.msra.mxu1 %v2151_v2 }
 0x623   :  { %1789 = vmatprep.subr.bf16.mxu1 %v2076_v34 }
 0x6e8   :  { %v696_v48 = vpop.f32.mrb[6].mxu1 }
 0x6e9   :  { %v698_v51 = vpop.f32.mrb[7].mxu1  ;;  %v703_v0 = vrot.slane %v696_v48, 4 }
 0x6ea   :  { %v704_v54 = vrot.slane %v698_v51, 4 }
 0x6eb   :  { %v707_v4 = vadd.f32 %v703_v0, %v626_v3  ;;  %v869_v0 = vld [vmem:[#allocation3 + $0x8] sm:$0xc0] }
 0x6ec   :  { %v708_v55 = vadd.f32 %v704_v54, %v627_v53  ;;  %v873_v3 = vrot.slane %v869_v0, 6 }
 0x6ed   :  { %v709_v5 = vmul.f32 0.5, %v707_v4 }
 0x6ee   :  { %v710_v56 = vmul.f32 %v708_v55, %v2177_v36 }
 0x6f0   :  { %1859 = vtanh.f32 %v710_v56 }
 0x6f1   :  { %1861 = vtanh.f32 %v709_v5  ;;  %v877_v5 = vadd.f32 %v873_v3, %v867_v1 }
 0x6fa   :  { %v1860_v57 = vpop.eup %1859 }
 0x6fb   :  { %v714_v58 = vmul.f32 %v1860_v57, %v2177_v36  ;;  %v1862_v6 = vpop.eup %1861 }
 0x6fc   :  { %v713_v8 = vmul.f32 0.5, %v1862_v6 }
 0x6fd   :  { %v716_v60 = vadd.f32 %v714_v58, %v2181_v43 }
 0x6fe   :  { %v715_v9 = vadd.f32 0.5, %v713_v8 }
 0x6ff   :  { %722 = vrot.lane.b32.xlu0 %v716_v60, %s1950_s5 }
 0x700   :  { %v720_v14 = vmul.f32 %v718_v13, %v715_v9 }
 0x771   :  { %v723_v10 = vpop.permute.xlu0 %722 }
 0x772   :  { %v725_v12 = vmul.f32 %v723_v10, %v715_v9 }
 0x774   :  { %727 = vrot.lane.b32.xlu1 %v725_v12, %s1950_s5 }
 0x7e6   :  { %v728_v15 = vpop.permute.xlu1 %727 }
 0x7e7   :  { %v730_v16 = vadd.f32 %v728_v15, %v720_v14  ;;  %v868_v14 = vld [vmem:[#allocation3] sm:$0xc0]  ;;  %v866_v15 = vld [vmem:[#allocation2 + $0x10] sm:$0x3] }
 0x7e9   :  { %1863 = vtanh.f32 %v730_v16  ;;  %v843_v53 = vrot.slane %v730_v16, 6  ;;  %v872_v16 = vrot.slane %v868_v14, 6 }
 0x7f3   :  { %v1864_v17 = vpop.eup %1863 }
 0x7f4   :  { %733 = vrot.lane.b32.xlu0 %v1864_v17, %s1950_s5  ;;  %v876_v17 = vadd.f32 %v872_v16, %v866_v15 }
 0x866   :  { %v734_v18 = vpop.permute.xlu0 %733 }
 0x867   :  { %v736_v19 = vmul.f32 %v734_v18, %v716_v60 }
 0x869   :  { %v738_v20 = vrot.slane %v736_v19, 4 }
 0x86b   :  { %v740_v21 = vmax.f32 %v615_v45, %v738_v20  ;;  %1600 = vmatmul.mubr.msk.f32.vlgmr.msra.gmra.mrb[8].mxu0 %vm387_vm6, %v738_v20 }
 0x86c   :  { %1775 = vmatpush1.bf16.msra.mxu0 %v2092_v39  ;;  %1061 = vmatprep.mubr.f32.mxu0 %v1948_v11 }
 0x86d   :  { %1777 = vmatprep.subr.bf16.mxu0 %v2094_v41 }
 0x870   :  { %1779 = vmatpush1.bf16.msra.mxu0 %v2112_v49 }
 0x871   :  { %1781 = vmatprep.subr.bf16.mxu0 %v2116_v52 }
 0x874   :  { %1783 = vmatpush1.bf16.msra.mxu0 %v2134_v59 }
 0x875   :  { %1785 = vmatprep.subr.bf16.mxu0 %v2138_v61 }
 0x878   :  { %1787 = vmatpush1.bf16.msra.mxu0 %v2151_v2 }
 0x879   :  { %1805 = vmatprep.subr.bf16.mxu0 %v2076_v34  ;;  %v747_v34 = vrot.slane %v743_v37, 2  ;;  %v983_v37 = vld [vmem:[#allocation2 + $0x18] sm:$0xc] }
 0x87b   :  { %v751_v42 = vadd.f32 %v747_v34, %v741_v40 }
 0x93e   :  { %v821_v25 = vpop.f32.mrb[8].mxu0 }
 0x93f   :  { %v823_v27 = vpop.f32.mrb[9].mxu0  ;;  %v828_v38 = vrot.slane %v821_v25, 2 }
 0x940   :  { %v829_v29 = vrot.slane %v823_v27, 2 }
 0x941   :  { %v832_v44 = vadd.f32 %v828_v38, %v751_v42 }
 0x942   :  { %v833_v30 = vadd.f32 %v829_v29, %v752_v28 }
 0x943   :  { %v834_v45 = vmul.f32 0.5, %v832_v44 }
 0x944   :  { %v835_v31 = vmul.f32 %v833_v30, %v2177_v36 }
 0x946   :  { %1865 = vtanh.f32 %v835_v31 }
 0x947   :  { %1867 = vtanh.f32 %v834_v45 }
 0x950   :  { %v1866_v32 = vpop.eup %1865 }
 0x951   :  { %v839_v33 = vmul.f32 %v1866_v32, %v2177_v36  ;;  %v1868_v46 = vpop.eup %1867 }
 0x952   :  { %v838_v47 = vmul.f32 0.5, %v1868_v46 }
 0x953   :  { %v841_v35 = vadd.f32 %v839_v33, %v2181_v43 }
 0x954   :  { %v840_v48 = vadd.f32 0.5, %v838_v47 }
 0x955   :  { %847 = vrot.lane.b32.xlu1 %v841_v35, %s1950_s5 }
 0x956   :  { %v845_v54 = vmul.f32 %v843_v53, %v840_v48 }
 0x9c7   :  { %v848_v50 = vpop.permute.xlu1 %847 }
 0x9c8   :  { %v850_v51 = vmul.f32 %v848_v50, %v840_v48 }
 0x9ca   :  { %852 = vrot.lane.b32.xlu0 %v850_v51, %s1950_s5 }
 0xa3c   :  { %v853_v55 = vpop.permute.xlu0 %852 }
 0xa3d   :  { %v855_v56 = vadd.f32 %v853_v55, %v845_v54 }
 0xa3f   :  { %1869 = vtanh.f32 %v855_v56  ;;  %v962_v26 = vrot.slane %v855_v56, 6 }
 0xa49   :  { %v1870_v57 = vpop.eup %1869 }
 0xa4a   :  { %858 = vrot.lane.b32.xlu1 %v1870_v57, %s1950_s5 }
 0xabc   :  { %v859_v58 = vpop.permute.xlu1 %858 }
 0xabd   :  { %v861_v60 = vmul.f32 %v859_v58, %v841_v35  ;;  %v985_v35 = vld [vmem:[#allocation3 + $0x8] sm:$0x30] }
 0xabe   :  { %v989_v38 = vrot.slane %v985_v35, 2 }
 0xabf   :  { %v863_v62 = vrot.slane %v861_v60, 6 }
 0xac1   :  { %v2236_v63 = vmax.f32 %v740_v21, %v863_v62  ;;  %1601 = vmatmul.mubr.msk.f32.vlgmr.msra.gmra.mrb[8].mxu1 %vm387_vm6, %v863_v62 }
 0xac2   :  { %1791 = vmatpush1.bf16.msra.mxu1 %v2092_v39  ;;  %1186 = vmatprep.mubr.f32.mxu1 %v1948_v11 }
 0xac3   :  { %1793 = vmatprep.subr.bf16.mxu1 %v2094_v41 }
 0xac6   :  { %1795 = vmatpush1.bf16.msra.mxu1 %v2112_v49 }
 0xac7   :  { %1797 = vmatprep.subr.bf16.mxu1 %v2116_v52 }
 0xaca   :  { %1799 = vmatpush1.bf16.msra.mxu1 %v2134_v59 }
 0xacb   :  { %1801 = vmatprep.subr.bf16.mxu1 %v2138_v61 }
 0xace   :  { %1803 = vmatpush1.bf16.msra.mxu1 %v2151_v2 }
 0xb94   :  { %v946_v4 = vpop.f32.mrb[8].mxu1 }
 0xb95   :  { %v948_v6 = vpop.f32.mrb[9].mxu1  ;;  %v951_v18 = vadd.f32 %v946_v4, %v876_v17 }
 0xb96   :  { %v952_v8 = vadd.f32 %v948_v6, %v877_v5  ;;  %v1111_v5 = vld [vmem:[#allocation3 + $0x8] sm:$0xc]  ;;  %v1109_v6 = vld [vmem:[#allocation2 + $0x18] sm:$0x30] }
 0xb97   :  { %v953_v19 = vmul.f32 0.5, %v951_v18 }
 0xb98   :  { %v954_v9 = vmul.f32 %v952_v8, %v2177_v36 }
 0xb9a   :  { %1871 = vtanh.f32 %v954_v9  ;;  %v1115_v9 = vrot.slane %v1111_v5, 6 }
 0xb9b   :  { %1873 = vtanh.f32 %v953_v19  ;;  %v1110_v19 = vld [vmem:[#allocation3] sm:$0xc] }
 0xba4   :  { %v1872_v10 = vpop.eup %1871 }
 0xba5   :  { %v958_v12 = vmul.f32 %v1872_v10, %v2177_v36  ;;  %v1874_v20 = vpop.eup %1873 }
 0xba6   :  { %v957_v21 = vmul.f32 0.5, %v1874_v20  ;;  %v1108_v20 = vld [vmem:[#allocation2 + $0x10] sm:$0x30] }
 0xba7   :  { %v960_v13 = vadd.f32 %v958_v12, %v2181_v43  ;;  %v1119_v12 = vadd.f32 %v1115_v9, %v1109_v6 }
 0xba8   :  { %v959_v22 = vadd.f32 0.5, %v957_v21  ;;  %v1114_v21 = vrot.slane %v1110_v19, 6 }
 0xba9   :  { %966 = vrot.lane.b32.xlu0 %v960_v13, %s1950_s5 }
 0xbaa   :  { %v964_v27 = vmul.f32 %v962_v26, %v959_v22 }
 0xc1b   :  { %v967_v23 = vpop.permute.xlu0 %966 }
 0xc1c   :  { %v969_v25 = vmul.f32 %v967_v23, %v959_v22  ;;  %v1118_v23 = vadd.f32 %v1114_v21, %v1108_v20  ;;  %v1366_v20 = vld [vmem:[%s2363_s7 + $0x40] sm:$0xff]  ;;  %v1367_v21 = vld [vmem:[%s2363_s7 + $0x48] sm:$0xff] }
 0xc1e   :  { %971 = vrot.lane.b32.xlu1 %v969_v25, %s1950_s5 }
 0xc90   :  { %v972_v28 = vpop.permute.xlu1 %971 }
 0xc91   :  { %v974_v29 = vadd.f32 %v972_v28, %v964_v27 }
 0xc93   :  { %1875 = vtanh.f32 %v974_v29  ;;  %v1085_v57 = vrot.slane %v974_v29, 6 }
 0xc9d   :  { %v1876_v30 = vpop.eup %1875 }
 0xc9e   :  { %977 = vrot.lane.b32.xlu0 %v1876_v30, %s1950_s5 }
 0xd10   :  { %v978_v31 = vpop.permute.xlu0 %977 }
 0xd11   :  { %v980_v32 = vmul.f32 %v978_v31, %v960_v13 }
 0xd13   :  { %v981_v33 = vmax.f32 %v2236_v63, %v980_v32  ;;  %1602 = vmatmul.mubr.msk.f32.vlgmr.msra.gmra.mrb[10].mxu0 %vm387_vm6, %v980_v32 }
 0xd14   :  { %1807 = vmatpush1.bf16.msra.mxu0 %v2092_v39  ;;  %1311 = vmatprep.mubr.f32.mxu0 %v1948_v11  ;;  %v993_v39 = vadd.f32 %v989_v38, %v983_v37 }
 0xd15   :  { %1809 = vmatprep.subr.bf16.mxu0 %v2094_v41 }
 0xd18   :  { %1811 = vmatpush1.bf16.msra.mxu0 %v2112_v49 }
 0xd19   :  { %1813 = vmatprep.subr.bf16.mxu0 %v2116_v52 }
 0xd1c   :  { %1815 = vmatpush1.bf16.msra.mxu0 %v2134_v59 }
 0xd1d   :  { %1817 = vmatprep.subr.bf16.mxu0 %v2138_v61  ;;  %v984_v61 = vld [vmem:[#allocation3] sm:$0x30] }
 0xd1e   :  { %v988_v45 = vrot.slane %v984_v61, 2  ;;  %v1234_v61 = vld [vmem:[#allocation2 + $0x18] sm:$0xc0] }
 0xd20   :  { %1819 = vmatpush1.bf16.msra.mxu0 %v2151_v2  ;;  %v982_v2 = vld [vmem:[#allocation2 + $0x10] sm:$0xc] }
 0xd21   :  { %v992_v47 = vadd.f32 %v988_v45, %v982_v2 }
 0xde6   :  { %v1063_v34 = vpop.f32.mrb[10].mxu0 }
 0xde7   :  { %v1065_v40 = vpop.f32.mrb[11].mxu0  ;;  %v1070_v46 = vrot.slane %v1063_v34, 6  ;;  %v1951_v34 = vmov 0.0|0.0  }
 0xde8   :  { %v1071_v42 = vrot.slane %v1065_v40, 6  ;;  %1832 = vmatprep.subr.bf16.mxu0 %v1951_v34  ;;  %1820 = vmatprep.subr.bf16.mxu1 %v1951_v34  ;;  %v1358_v40 = vld [vmem:[%s2363_s7] sm:$0xff] }
 0xde9   :  { %v1074_v48 = vadd.f32 %v1070_v46, %v992_v47 }
 0xdea   :  { %v1075_v44 = vadd.f32 %v1071_v42, %v993_v39  ;;  %v1359_v39 = vld [vmem:[%s2363_s7 + $0x8] sm:$0xff] }
 0xdeb   :  { %v1076_v50 = vmul.f32 0.5, %v1074_v48 }
 0xdec   :  { %v1077_v41 = vmul.f32 %v1075_v44, %v2177_v36 }
 0xdee   :  { %1877 = vtanh.f32 %v1077_v41  ;;  %v1833_v41 = vpack.c.bf16 %v1359_v39, %v1358_v40 }
 0xdef   :  { %1879 = vtanh.f32 %v1076_v50 }
 0xdf8   :  { %v1878_v49 = vpop.eup %1877 }
 0xdf9   :  { %v1081_v52 = vmul.f32 %v1878_v49, %v2177_v36  ;;  %v1880_v51 = vpop.eup %1879 }
 0xdfa   :  { %v1080_v53 = vmul.f32 0.5, %v1880_v51 }
 0xdfb   :  { %v1083_v59 = vadd.f32 %v1081_v52, %v2181_v43 }
 0xdfc   :  { %v1082_v54 = vadd.f32 0.5, %v1080_v53 }
 0xdfd   :  { %1089 = vrot.lane.b32.xlu1 %v1083_v59, %s1950_s5 }
 0xdfe   :  { %v1087_v58 = vmul.f32 %v1085_v57, %v1082_v54  ;;  %v1233_v57 = vld [vmem:[#allocation2 + $0x10] sm:$0xc0] }
 0xe6f   :  { %v1090_v55 = vpop.permute.xlu1 %1089 }
 0xe70   :  { %v1092_v56 = vmul.f32 %v1090_v55, %v1082_v54 }
 0xe72   :  { %1094 = vrot.lane.b32.xlu0 %v1092_v56, %s1950_s5 }
 0xee4   :  { %v1095_v60 = vpop.permute.xlu0 %1094 }
 0xee5   :  { %v1097_v62 = vadd.f32 %v1095_v60, %v1087_v58 }
 0xee7   :  { %1881 = vtanh.f32 %v1097_v62  ;;  %v1210_v32 = vrot.slane %v1097_v62, 6 }
 0xef1   :  { %v1882_v63 = vpop.eup %1881 }
 0xef2   :  { %1100 = vrot.lane.b32.xlu1 %v1882_v63, %s1950_s5 }
 0xf64   :  { %v1101_v0 = vpop.permute.xlu1 %1100 }
 0xf65   :  { %v1103_v1 = vmul.f32 %v1101_v0, %v1083_v59  ;;  %v1236_v59 = vld [vmem:[#allocation3 + $0x8] sm:$0x3] }
 0xf66   :  { %v1240_v45 = vrot.slane %v1236_v59, 2 }
 0xf67   :  { %v1105_v3 = vrot.slane %v1103_v1, 2 }
 0xf68   :  { %v1244_v47 = vadd.f32 %v1240_v45, %v1234_v61 }
 0xf69   :  { %v1107_v4 = vmax.f32 %v981_v33, %v1105_v3  ;;  %1603 = vmatmul.mubr.msk.f32.vlgmr.msra.gmra.mrb[10].mxu1 %vm387_vm6, %v1105_v3 }
 0xf6a   :  { %1662 = vmatprep.mubr.msk.f32.mxu1 %vm1952_vm7, %v1948_v11 }
0x103c   :  { %v1188_v8 = vpop.f32.mrb[10].mxu1 }
0x103d   :  { %v1190_v10 = vpop.f32.mrb[11].mxu1  ;;  %v1195_v22 = vrot.slane %v1188_v8, 4  ;;  %v1362_v8 = vld [vmem:[%s2363_s7 + $0x20] sm:$0xff] }
0x103e   :  { %v1196_v13 = vrot.slane %v1190_v10, 4  ;;  %v1363_v10 = vld [vmem:[%s2363_s7 + $0x28] sm:$0xff] }
0x103f   :  { %v1199_v25 = vadd.f32 %v1195_v22, %v1118_v23  ;;  %v1830_v22 = vpack.c.bf16 %v1367_v21, %v1366_v20 }
0x1040   :  { %v1200_v14 = vadd.f32 %v1196_v13, %v1119_v12  ;;  %v1824_v12 = vpack.c.bf16 %v1363_v10, %v1362_v8  ;;  %v1364_v13 = vld [vmem:[%s2363_s7 + $0x30] sm:$0xff] }
0x1041   :  { %v1201_v26 = vmul.f32 0.5, %v1199_v25  ;;  %v1536_v25 = vld [vmem:[%s2357_s1] sm:$0x3]  ;;  %s1953_s1 = smov [#allocation4]  }
0x1042   :  { %v1202_v15 = vmul.f32 %v1200_v14, %v2177_v36  ;;  %v1365_v14 = vld [vmem:[%s2363_s7 + $0x38] sm:$0xff] }
0x1044   :  { %1883 = vtanh.f32 %v1202_v15  ;;  %v1827_v15 = vpack.c.bf16 %v1365_v14, %v1364_v13 }
0x1045   :  { %1885 = vtanh.f32 %v1201_v26 }
0x104e   :  { %v1884_v16 = vpop.eup %1883 }
0x104f   :  { %v1206_v17 = vmul.f32 %v1884_v16, %v2177_v36  ;;  %v1886_v27 = vpop.eup %1885 }
0x1050   :  { %v1205_v28 = vmul.f32 0.5, %v1886_v27 }
0x1051   :  { %v1208_v18 = vadd.f32 %v1206_v17, %v2181_v43 }
0x1052   :  { %v1207_v29 = vadd.f32 0.5, %v1205_v28 }
0x1053   :  { %1214 = vrot.lane.b32.xlu0 %v1208_v18, %s1950_s5 }
0x1054   :  { %v1212_v33 = vmul.f32 %v1210_v32, %v1207_v29 }
0x10c5   :  { %v1215_v30 = vpop.permute.xlu0 %1214 }
0x10c6   :  { %v1217_v31 = vmul.f32 %v1215_v30, %v1207_v29 }
0x10c8   :  { %1219 = vrot.lane.b32.xlu1 %v1217_v31, %s1950_s5  ;;  %v1607_v31 = vld [vmem:[%s2364_s8] ss:$0 sm:$0xff]  ;;  %s1569_s8 = sshll.u32 %s1953_s1, 4  ;;  %s1570_s8 = int_to_ptr.vmem [resolvable:$true] %s1569_s8 }
0x10c9   :  { %s1899_s6 = scalar_lea.vmem %s1570_s8, 32  ;;  %p1904_p1 = scmp.lt.s32.totalorder %s1570_s8, %s1570_s8 }
0x10ca   :  { %p1900_p0 = scmp.ne.s32.totalorder %s1570_s8, %s1899_s6  ;;  %p1905_p2 = scmp.lt.s32.totalorder %s1899_s6, %s1899_s6 }
0x10cc   :  { %p1906_p3 = por %p1905_p2, %p1904_p1 }
0x10ce   :  { %p1907_p4 = pnand %p1906_p3, %p1900_p0 }
0x113a   :  { %v1220_v35 = vpop.permute.xlu1 %1219 }
0x113b   :  { %v2275_v37 = vadd.f32 %v1220_v35, %v1212_v33 }
0x113d   :  { %1887 = vtanh.f32 %v2275_v37  ;;  %v1335_v16 = vrot.slane %v2275_v37, 6 }
0x1147   :  { %v1888_v38 = vpop.eup %1887 }
0x1148   :  { %1225 = vrot.lane.b32.xlu0 %v1888_v38, %s1950_s5 }
0x11ba   :  { %v1226_v42 = vpop.permute.xlu0 %1225 }
0x11bb   :  { %v1228_v44 = vmul.f32 %v1226_v42, %v1208_v18 }
0x11bd   :  { %v1230_v49 = vrot.slane %v1228_v44, 4 }
0x11bf   :  { %v2286_v52 = vmax.f32 %v1107_v4, %v1230_v49  ;;  %1604 = vmatmul.mubr.msk.f32.vlgmr.msra.gmra.mrb[12].mxu0 %vm387_vm6, %v1230_v49 }
0x11c0   :  { %1834 = vmatpush3.bf16.msra.mxu0 %v1833_v41  ;;  %1669 = vmatprep.mubr.msk.f32.mxu0 %vm1952_vm7, %v1948_v11 }
0x11c3   :  { %1670 = vmatmul.mubr.msk.f32.vlgmr.msra.gmra.mrb[14].mxu0 %vm159_vm4, %v2158_v7  ;;  %v1235_v7 = vld [vmem:[#allocation3] sm:$0x3] }
0x11c4   :  { %v1239_v58 = vrot.slane %v1235_v7, 2 }
0x11c6   :  { %v1243_v62 = vadd.f32 %v1239_v58, %v1233_v57 }
0x1292   :  { %v1313_v2 = vpop.f32.mrb[12].mxu0 }
0x1293   :  { %v1315_v46 = vpop.f32.mrb[13].mxu0  ;;  %v1320_v60 = vrot.slane %v1313_v2, 2 }
0x1294   :  { %v1321_v48 = vrot.slane %v1315_v46, 2 }
0x1295   :  { %v1324_v63 = vadd.f32 %v1320_v60, %v1243_v62 }
0x1296   :  { %v1325_v50 = vadd.f32 %v1321_v48, %v1244_v47  ;;  %v1510_v51 = vpop.f32.mrb[14].mxu0 }
0x1297   :  { %v1671_v53 = vpop.f32.mrb[15].mxu0  ;;  %v1326_v0 = vmul.f32 0.5, %v1324_v63 }
0x1298   :  { %v1327_v54 = vmul.f32 %v1325_v50, %v2177_v36 }
0x129a   :  { %1889 = vtanh.f32 %v1327_v54 }
0x129b   :  { %1891 = vtanh.f32 %v1326_v0 }
0x12a4   :  { %v1890_v55 = vpop.eup %1889 }
0x12a5   :  { %v1331_v56 = vmul.f32 %v1890_v55, %v2177_v36  ;;  %v1892_v1 = vpop.eup %1891  ;;  %v1360_v36 = vld [vmem:[%s2363_s7 + $0x10] sm:$0xff] }
0x12a6   :  { %v1330_v3 = vmul.f32 0.5, %v1892_v1 }
0x12a7   :  { %v1333_v11 = vadd.f32 %v1331_v56, %v2181_v43  ;;  %v1361_v43 = vld [vmem:[%s2363_s7 + $0x18] sm:$0xff] }
0x12a8   :  { %v1332_v4 = vadd.f32 0.5, %v1330_v3  ;;  %v1821_v9 = vpack.c.bf16 %v1361_v43, %v1360_v36 }
0x12a9   :  { %1339 = vrot.lane.b32.xlu1 %v1333_v11, %s1950_s5 }
0x12aa   :  { %1822 = vmatpush3.bf16.msra.mxu1 %v1821_v9  ;;  %v1337_v17 = vmul.f32 %v1335_v16, %v1332_v4 }
0x12ab   :  { %1823 = vmatprep.subr.bf16.mxu1 %v1951_v34 }
0x12ae   :  { %1825 = vmatpush3.bf16.msra.mxu1 %v1824_v12 }
0x12af   :  { %1826 = vmatprep.subr.bf16.mxu1 %v1951_v34 }
0x12b2   :  { %1828 = vmatpush3.bf16.msra.mxu1 %v1827_v15 }
0x12b3   :  { %1829 = vmatprep.subr.bf16.mxu1 %v1951_v34 }
0x12b6   :  { %1831 = vmatpush3.bf16.msra.mxu1 %v1830_v22 }
0x131b   :  { %v1340_v5 = vpop.permute.xlu1 %1339 }
0x131c   :  { %v1342_v6 = vmul.f32 %v1340_v5, %v1332_v4 }
0x131e   :  { %1344 = vrot.lane.b32.xlu0 %v1342_v6, %s1950_s5 }
0x1390   :  { %v1345_v18 = vpop.permute.xlu0 %1344 }
0x1391   :  { %v1347_v19 = vadd.f32 %v1345_v18, %v1337_v17 }
0x1393   :  { %1893 = vtanh.f32 %v1347_v19 }
0x139d   :  { %v1894_v23 = vpop.eup %1893 }
0x139e   :  { %1350 = vrot.lane.b32.xlu1 %v1894_v23, %s1950_s5 }
0x13a2   :  { %1538 = vperm.xlu1 %1846, %v1536_v25  }
0x1410   :  { %v1351_v26 = vpop.permute.xlu1 %1350 }
0x1411   :  { %v1353_v27 = vmul.f32 %v1351_v26, %v1333_v11 }
0x1413   :  { %v1355_v28 = vrot.slane %v1353_v27, 6 }
0x1415   :  { %v1357_v29 = vmax.f32 %v2286_v52, %v1355_v28 }
0x1417   :  { %1663 = vmatmul.mubr.msk.f32.vlgmr.msra.gmra.mrb[12].mxu1 %vm387_vm6, %v1357_v29 }
0x1421   :  { %v1539_v32 = vpop.permute.xlu1 %1538 }
0x1422   :  { %vm1540_vm9 = vcmp.eq.s32.totalorder %v2057_v24, %v1539_v32 }
0x14ea   :  { %v1437_v30 = vpop.f32.mrb[12].mxu1 }
0x14eb   :  { %v1511_v33 = vadd.f32 %v1510_v51, %v1437_v30  ;;  %v1664_v35 = vpop.f32.mrb[13].mxu1 }
0x14ed   :  { %v1521_v37 = vadd.f32 %v1607_v31, %v1511_v33 }
0x14ef   :  { %v1524_v34 = vsel %vm1522_vm8, %v1521_v37, -inf  ;;  %1523 = vst.msk [vmem:[#allocation4] sm:$0x3] %vm1522_vm8, %v1521_v37  ;;  %v1541_v38 = vsel %vm1540_vm9, %v1521_v37, 0.0 }
0x14f0   :  { %1525 = vmax.xlane.f32.xlu0 %v1524_v34  ;;  %v1542_v40 = vsel %vm1522_vm8, %v1541_v38, 0.0 }
0x14f4   :  { %1543 = vadd.xlane.f32.xlu0 %v1542_v40 }
0x157d   :  { %v1526_v39 = vpop.xlane.xlu0 %1525 }
0x157e   :  { %v1527_v42 = vsub.f32 %v1521_v37, %v1526_v39 }
0x1580   :  { %v1528_v44 = vmul.f32 1.442695, %v1527_v42 }
0x1581   :  { %v1544_v45 = vpop.xlane.xlu0 %1543 }
0x1582   :  { %1895 = vpow2.f32 %v1528_v44 }
0x158c   :  { %v1896_v41 = vpop.eup %1895 }
0x158d   :  { %v1530_v49 = vsel %vm1522_vm8, %v1896_v41, 0.0 }
0x158e   :  { %1531 = vadd.xlane.f32.xlu1 %v1530_v49 }
0x161b   :  { %v1532_v52 = vpop.xlane.xlu1 %1531 }
0x161c   :  { %1897 = vlog2.f32 %v1532_v52 }
0x1626   :  { %v1898_v59 = vpop.eup %1897 }
0x1627   :  { %v1534_v61 = vmul.f32 0.6931472, %v1898_v59 }
0x1629   :  { %v1535_v2 = vadd.f32 %v1534_v61, %v1526_v39 }
0x162b   :  { %v1545_v24 = vsub.f32 %v1535_v2, %v1544_v45 }
0x162d   :  { %v1547_v46 = vsel %vm1546_vm10, %v1545_v24, 0.0 }
0x162e   :  { %1548 = vadd.xlane.f32.xlu0 %v1547_v46 }
0x162f   :  { %1910 = shalt.err (!%p1907_p4)
}
0x1630   :  { %s1911_s11 = scalar_lea.hbm %s2365_s9, 32 }
0x1631   :  { %p1912_p5 = scmp.ne.s32.totalorder %s2365_s9, %s1911_s11  ;;  %p1915_p6 = scmp.lt.u32.totalorder %s1911_s11, %s2365_s9 }
0x1633   :  { %p1917_p7 = pnand %p1915_p6, %p1912_p5 }
0x1635   :  { %1920 = shalt.err (!%p1917_p7)
}
0x1636   :  { %1572 = dma.vmem_to_hbm [thread:$0]  %s1570_s8, 32, %s2365_s9, [#allocation5]   ;;  %vm1561_vm11 = vcmask 0  }
0x1637   :  { %s1954_s18 = smov [#allocation6]  }
0x1638   :  { %s1579_s19 = sshll.u32 %s1954_s18, 4  ;;  %s1580_s19 = int_to_ptr.vmem [resolvable:$true] %s1579_s19 }
0x1639   :  { %s1921_s2 = scalar_lea.vmem %s1580_s19, 16  ;;  %s1925_s4 = scalar_lea.vmem %s1580_s19, 32 }
0x163a   :  { %p1922_p8 = scmp.ne.s32.totalorder %s1580_s19, %s1921_s2  ;;  %p1926_p9 = scmp.lt.s32.totalorder %s1580_s19, %s1580_s19 }
0x163b   :  { %p1927_p10 = scmp.lt.s32.totalorder %s1925_s4, %s1921_s2 }
0x163d   :  { %p1928_p11 = por %p1927_p10, %p1926_p9 }
0x163f   :  { %p1929_p12 = pnand %p1928_p11, %p1922_p8 }
0x16bb   :  { %v1549_v47 = vpop.xlane.xlu0 %1548 }
0x16bc   :  { %v1550_v48 = vrot.slane %v1549_v47, 4 }
0x16be   :  { %v1551_v50 = vadd.f32 %v1550_v48, %v1549_v47 }
0x16c0   :  { %v1552_v51 = vrot.slane %v1551_v50, 2 }
0x16c2   :  { %v1553_v53 = vadd.f32 %v1552_v51, %v1551_v50 }
0x16c4   :  { %v1554_v54 = vrot.slane %v1553_v53, 1 }
0x16c6   :  { %v1555_v55 = vadd.f32 %v1554_v54, %v1553_v53 }
0x16c8   :  { %1835 = vpush %v1555_v55 }
0x16f9   :  { %s1836_s20 = spop %1835 }
0x16fa   :  { %s1559_s21 = smul.f32 0.5, %s1836_s20 }
0x16fc   :  { %v1560_v56 = vstv %s1559_s21 }
0x16fd   :  { %1562 = vst.msk [vmem:[#allocation6] sm:$0x1] %vm1561_vm11, %v1560_v56 }
0x16fe   :  { %1932 = shalt.err (!%p1929_p12)
}
0x16ff   :  { %s1933_s23 = scalar_lea.hbm %s2366_s10, 16 }
0x1700   :  { %p1934_p13 = scmp.ne.s32.totalorder %s2366_s10, %s1933_s23  ;;  %p1937_p0 = scmp.lt.u32.totalorder %s1933_s23, %s2366_s10 }
0x1702   :  { %p1939_p1 = pnand %p1937_p0, %p1934_p13 }
0x1704   :  { %1942 = shalt.err (!%p1939_p1)
}
0x1705   :  { %1582 = dma.vmem_to_hbm [thread:$0]  %s1580_s19, 16, %s2366_s10, [#allocation7]  }
0x1706   :  { %1943 = dma.done.wait [#allocation5], 32  }
0x1707   :  { %1944 = vsyncadd [#allocation5], 4294967264 }
0x1708   :  { %1945 = dma.done.wait [#allocation7], 16  }
0x1709   :  { %1946 = vsyncadd [#allocation7], 4294967280 }
0x170a   :  { %1589 = vsyncpa [#allocation5], 1 }
0x170b   :  { %1590 = vsyncpa [#allocation7], 1 }

</bundles_post_ra>
